<compile_context>
chip_gen: v7x
topology: tpu7x:2x2x1
jax: 0.10.0
libtpu: 0.0.40
codegen_flags: <defaults>
</compile_context>

<pallas_src>
import functools

import jax
import jax.numpy as jnp
from jax import lax
from jax.experimental import pallas as pl
from jax.experimental.pallas import tpu as pltpu


# ----------------------------- Pallas kernel -----------------------------

def _l2norm_kernel(x_ref, w_ref, o_ref, *, eps):
    x = x_ref[...].astype(jnp.float32)            # (1, C, tl)
    ssq = jnp.sum(x * x, axis=1, keepdims=True)   # (1, 1, tl) sublane reduce
    inv = lax.rsqrt(ssq + eps)                    # EUP; eps inside sqrt, as in the module
    o_ref[...] = ((x * inv) * w_ref[...]).astype(o_ref.dtype)


def _choose_hw_tile(HW, C, itemsize, max_block_bytes=3 << 20, max_lanes=2048):
    """Lane-tile for the flattened H*W axis.

    Either the full spatial extent (single block, layout-legal for any HW) or
    a multiple of 128 lanes bounded by a conservative per-block VMEM budget so
    double-buffered in+out stays under every generation's default scoped
    VMEM limit (v5e 16 MiB / v6e 32 MiB / v7x 32 MiB).
    """
    budget = max(128, (max_block_bytes // (itemsize * max(C, 1))) // 128 * 128)
    tl = min(budget, max_lanes)
    if HW <= tl:
        return HW          # full extent: always legal, single lane block
    return tl              # multiple of 128; ragged trailing block is masked


def l2norm(x_nchw, weight, eps=1e-10):
    """Pallas L2Norm: NCHW in, NCHW out, identical semantics to the nn.Module."""
    N, C, H, W = x_nchw.shape
    assert weight.shape == (C,)
    HW = H * W

    x3 = x_nchw.reshape(N, C, HW)                 # free, contiguous view
    itemsize = x3.dtype.itemsize
    tl = _choose_hw_tile(HW, C, itemsize)
    n_hw = pl.cdiv(HW, tl)

    cost = pl.CostEstimate(
        flops=4 * N * C * HW,
        transcendentals=N * HW,
        bytes_accessed=(2 * N * C * HW + C) * itemsize,
    )

    out = pl.pallas_call(
        functools.partial(_l2norm_kernel, eps=eps),
        out_shape=jax.ShapeDtypeStruct((N, C, HW), x3.dtype),
        grid_spec=pltpu.PrefetchScalarGridSpec(
            num_scalar_prefetch=0,
            grid=(N, n_hw),
            in_specs=[
                pl.BlockSpec((1, C, tl), lambda n, j: (n, 0, j)),
                pl.BlockSpec((1, C, 1), lambda n, j: (0, 0, 0)),
            ],
            out_specs=pl.BlockSpec((1, C, tl), lambda n, j: (n, 0, j)),
        ),
        compiler_params=pltpu.CompilerParams(
            dimension_semantics=("parallel", "parallel")),
        cost_estimate=cost,
    )(x3, weight.reshape(1, C, 1))

    return out.reshape(N, C, H, W)                # free view back to NCHW


# ------------------------- pure-JAX reference ----------------------------

def l2norm_ref(x, weight, eps=1e-10):
    norm = jnp.sqrt(jnp.sum(x * x, axis=1, keepdims=True) + eps)
    return x / norm * weight[None, :, None, None]


# ------------------------------- driver ----------------------------------

if __name__ == "__main__":
    key = jax.random.PRNGKey(0)
    keys = jax.random.split(key, 4)

    cases = [
        ((2, 512, 16, 16), keys[0]),   # SSD conv4_3-like: HW=256, one lane block/image
        ((1, 384, 19, 19), keys[1]),   # HW=361 (not a multiple of 128), full-extent block
        ((2, 4, 16, 16),   keys[2]),   # tiny channel count on the sublane axis
        ((1, 32, 50, 50),  keys[3]),   # HW=2500 -> tiled lanes (2048) + masked ragged block
    ]
    for shape, k in cases:
        C = shape[1]
        x = jax.random.normal(k, shape, jnp.float32)
        w = jnp.full((C,), 20.0, jnp.float32)   # reset_parameters: gamma = 20
        y = jax.block_until_ready(l2norm(x, w))
        y_ref = l2norm_ref(x, w)
        assert y.shape == x.shape, (y.shape, x.shape)
        assert bool(jnp.isfinite(y).all())
        err = float(jnp.max(jnp.abs(y - y_ref)))
        assert err < 1e-4, (shape, err)

    print("KERNEL_OK")
</pallas_src>

<mosaic_0001>
module attributes {stable_mosaic.version = 11 : i64} {
  func.func @_l2norm_kernel(%arg0: i32, %arg1: i32, %arg2: memref<1x512x256xf32, #tpu.memory_space<vmem>>, %arg3: memref<1x512x1xf32, #tpu.memory_space<vmem>>, %arg4: memref<1x512x256xf32, #tpu.memory_space<vmem>>) attributes {dimension_semantics = [#tpu.dimension_semantics<parallel>, #tpu.dimension_semantics<parallel>], iteration_bounds = array<i64: 2, 1>, scalar_prefetch = 0 : i64, scratch_operands = 0 : i64, tpu.core_type = #tpu.core_type<tc>, window_params = [{transform_indices = @transform_0, window_bounds = array<i64: 1, 512, 256>}, {pipeline_mode = #tpu.pipeline_mode<synchronous>, transform_indices = @transform_1, window_bounds = array<i64: 1, 512, 1>}, {transform_indices = @transform_2, window_bounds = array<i64: 1, 512, 256>}]} {
    %c0 = arith.constant 0 : index
    %c0_0 = arith.constant 0 : index
    %c0_1 = arith.constant 0 : index
    %0 = vector.load %arg2[%c0, %c0_0, %c0_1] : memref<1x512x256xf32, #tpu.memory_space<vmem>>, vector<1x512x256xf32>
    %1 = arith.mulf %0, %0 : vector<1x512x256xf32>
    %cst = arith.constant dense<0.000000e+00> : vector<1x256xf32>
    %2 = vector.multi_reduction <add>, %1, %cst [1] : vector<1x512x256xf32> to vector<1x256xf32>
    %3 = vector.shape_cast %2 : vector<1x256xf32> to vector<1x1x256xf32>
    %cst_2 = arith.constant 1.000000e-10 : f32
    %4 = vector.broadcast %cst_2 : f32 to vector<1x1x256xf32>
    %5 = arith.addf %3, %4 : vector<1x1x256xf32>
    %6 = math.rsqrt %5 : vector<1x1x256xf32>
    %7 = vector.broadcast %6 : vector<1x1x256xf32> to vector<1x512x256xf32>
    %8 = arith.mulf %0, %7 : vector<1x512x256xf32>
    %c0_3 = arith.constant 0 : index
    %c0_4 = arith.constant 0 : index
    %c0_5 = arith.constant 0 : index
    %9 = vector.load %arg3[%c0_3, %c0_4, %c0_5] : memref<1x512x1xf32, #tpu.memory_space<vmem>>, vector<1x512x1xf32>
    %10 = vector.broadcast %9 : vector<1x512x1xf32> to vector<1x512x256xf32>
    %11 = arith.mulf %8, %10 : vector<1x512x256xf32>
    %c0_6 = arith.constant 0 : index
    %c0_7 = arith.constant 0 : index
    %c0_8 = arith.constant 0 : index
    %12 = vector.load %arg4[%c0_6, %c0_7, %c0_8] : memref<1x512x256xf32, #tpu.memory_space<vmem>>, vector<1x512x256xf32>
    tpu.vector_store %arg4[%c0_6, %c0_7, %c0_8], %11 {strides = array<i32>} : memref<1x512x256xf32, #tpu.memory_space<vmem>>, vector<1x512x256xf32>,
    return
  }
  func.func @transform_0(%arg0: i32, %arg1: i32) -> (i32, i32, i32) {
    %c0_i32 = arith.constant 0 : i32
    %c0_i32_0 = arith.constant 0 : i32
    return %arg0, %c0_i32, %arg1 : i32, i32, i32
  }
  func.func @transform_1(%arg0: i32, %arg1: i32) -> (i32, i32, i32) {
    %c0_i32 = arith.constant 0 : i32
    %c0_i32_0 = arith.constant 0 : i32
    %c0_i32_1 = arith.constant 0 : i32
    %c0_i32_2 = arith.constant 0 : i32
    return %c0_i32, %c0_i32_0, %c0_i32_1 : i32, i32, i32
  }
  func.func @transform_2(%arg0: i32, %arg1: i32) -> (i32, i32, i32) {
    %c0_i32 = arith.constant 0 : i32
    %c0_i32_0 = arith.constant 0 : i32
    return %arg0, %c0_i32, %arg1 : i32, i32, i32
  }
}

</mosaic_0001>

<bundles_post_ra>
// kernel: tpu_custom_call.1
= control target key start
LH: loop header
LB: loop body
LE: loop exit
PB: predicated region body
PF: predicated region fallthrough
CT: control target
= control target key end

     0   :  { %7 = vsyncpa [#allocation3], 0  ;;  %s3194_s0 = inlined_call_operand.hbm [shape: f32[2,512,256], index: 0, kind: input, shape index: {}]   ;;  %s3195_s1 = inlined_call_operand.vmem [shape: f32[1,512,1], index: 1, kind: input, shape index: {}]   ;;  %s3196_s2 = inlined_call_operand.hbm [shape: f32[2,512,256], index: 2, kind: output, shape index: {}]  }
   0x1   :  { %9 = vsyncpa [#allocation3 + $0x1], 0 }
   0x2   :  { %10 = vsyncpa [#allocation4], 0 }
   0x3   :  { %12 = vsyncpa [#allocation4 + $0x1], 0  ;;  %s1703_s9 = smov 0   ;;  %s1705_s10 = smov 0  }
   0x4   :  { %s1707_s11 = smov 0   ;;  %s1709_s12 = smov 0  }
   0x5   :  { %s1711_s13 = smov 0   ;;  %s1713_s14 = smov 0  }
   0x6 LB: > { %s1451_s15 = sadd.s32 4294967295, %s1679_s14   ;;  %s1452_s16 = sadd.s32 4294967294, %s1679_s14   ;;  %s1679_s14 = sphi %s1713_s14, %s18_s14   ;;  %s1675_s13 = sphi %s1711_s13, %s3457_s13   ;;  %s1671_s12 = sphi %s1709_s12, %s3456_s12   ;;  %s1667_s11 = sphi %s1707_s11, %s3455_s11   ;;  %s1663_s10 = sphi %s1705_s10, %s3454_s10   ;;  %s1659_s9 = sphi %s1703_s9, %s3453_s9  }
   0x7   : > { %s30_s17 = sadd.s32 1, %s1675_s13  ;;  %s39_s18 = sadd.s32 1, %s1667_s11 }
   0x8   : > { %p32_p0 = scmp.ge.s32.totalorder %s30_s17, 2  ;;  %p46_p1 = scmp.ne.s32.totalorder %s1667_s11, %s1663_s10 }
   0x9   : > { %p47_p2 = scmp.eq.s32.totalorder %s1679_s14, 0  ;;  %p52_p3 = scmp.ne.s32.totalorder %s1663_s10, %s1659_s9 }
   0xa   : > { %s3459_s17 = smov (%p32_p0, %s30_s17), 0  ;;  %p53_p5 = scmp.eq.s32.totalorder %s1451_s15, 0 }
   0xb   : > { %p1744_p4 = por %p47_p2, %p46_p1  ;;  %s34_s20 = ssub.s32 %s1675_s13, %s3459_s17 }
   0xc   : > { %p99_p6 = scmp.eq.s32.totalorder %s1451_s15, 1  ;;  %p37_p7 = scmp.eq.s32.totalorder %s34_s20, 0 }
   0xd   : > { %p1750_p8 = por %p53_p5, %p52_p3  ;;  %p105_p10 = scmp.eq.s32.totalorder %s1452_s16, 1 }
   0xe   : > { %p1754_p9 = por %p99_p6, %p46_p1  ;;  %p1480_p13 = scmp.lt.s32.totalorder %s1679_s14, 2 }
   0xf   : > { %s1759_s23 = scalar_select %p37_p7, %s1667_s11, %s39_s18  }
  0x10   : > { %s3282_s22 = scalar_select %p1754_p9, 1, 0 }
  0x11   : > { %p1761_p11 = por %p105_p10, %p52_p3  ;;  %s128_s25 = sand.u32 1, %s1667_s11  }
  0x12   : > { %s1455_s26 = sshll.u32 %s128_s25, 10  ;;  %s1466_s27 = sshll.u32 %s1675_s13, 14 }
  0x13   : > { %s3283_s24 = scalar_select %p1761_p11, 1, 0 }
  0x14   : > { %s1772_s30 = scalar_lea.hbm %s3194_s0, %s1466_s27  ;;  %s132_s3 = scalar_lea.vmem [#allocation2], %s1455_s26 }
  0x15   : > { %s141_s4 = sshll.u32 %s132_s3, 4  ;;  %p1778_p0 = pnand %p1480_p13, %p1744_p4  ;;  %s1774_s4 = int_to_ptr.vmem [resolvable:$true] %s141_s4 }
  0x16   : > { %s1783_s6 = scalar_lea.sflag [#allocation3], %s128_s25  ;;  %s1567_s7 = scalar_lea.hbm %s1772_s30, 16384 }
  0x17   : > { %p1568_p2 = scmp.ne.s32.totalorder %s1772_s30, %s1567_s7  ;;  %p1569_p3 = pneg %p1778_p0 }
  0x18   : > { %s1572_s16 = scalar_lea.hbm %s3194_s0, 32768  ;;  %p1573_p4 = scmp.lt.u32.totalorder %s1772_s30, %s3194_s0 }
  0x19   : > { %p1570_p5 = pnand %p1569_p3, %p1568_p2  ;;  %p1574_p7 = scmp.lt.u32.totalorder %s1572_s16, %s1567_s7 }
  0x1a   : > { %p1576_p13 = scmp.lt.u32.totalorder %s1567_s7, %s1772_s30 }
  0x1b   : > { %p1571_p6 = pneg %p1570_p5  ;;  %p1575_p10 = por %p1574_p7, %p1573_p4 }
  0x1d   : > { %p1577_p12 = por %p1576_p13, %p1575_p10 }
  0x1f   : > { %p1578_p1 = pnand %p1577_p12, %p1571_p6 }
  0x21   : > { %1581 = shalt.err (!%p1578_p1)
}
  0x22   : > { %s1582_s20 = scalar_lea.vmem %s1774_s4, 16384  ;;  %s1681_s25 = smov [#allocation2]  }
  0x23   : > { %p1583_p2 = scmp.ne.s32.totalorder %s1774_s4, %s1582_s20  ;;  %s1587_s26 = sshll.u32 %s1681_s25, 4  ;;  %s1588_s26 = int_to_ptr.vmem [resolvable:$false] %s1587_s26 }
  0x24   : > { %s1589_s27 = scalar_lea.vmem %s1588_s26, 32768  ;;  %p1590_p9 = scmp.lt.s32.totalorder %s1774_s4, %s1588_s26 }
  0x25   : > { %p1585_p5 = pnand %p1583_p2, %p1569_p3  ;;  %p1591_p4 = scmp.lt.s32.totalorder %s1589_s27, %s1582_s20 }
  0x27   : > { %p1586_p11 = pneg %p1585_p5  ;;  %p1592_p7 = por %p1591_p4, %p1590_p9 }
  0x29   : > { %p1593_p10 = pnand %p1592_p7, %p1586_p11 }
  0x2b   : > { %1596 = shalt.err (!%p1593_p10)
}
  0x2c   : > { %s1682_s28 = smov 256   ;;  %s1683_s29 = smov 16  }
  0x2d   : > { %1475 = dma.hbm_to_vmem [thread:$0]  (!%p1778_p0), %s1772_s30, 16384, %s1774_s4, %s1783_s6, %s1682_s28, %s1682_s28, %s1683_s29  }
  0x2e   : > { %p149_p12 = scmp.lt.s32.totalorder %s1679_s14, 3  ;;  %p3285_p1 = scmp.ge.s32.totalorder %s1679_s14, 1 }
  0x30   : > { %p150_p3 = pnand %p3285_p1, %p149_p12 }
  0x32   : > { %153 = sbr.rel (%p150_p3) target bundleno = 337 (0x151), region = 28 }
  0x39   : > { %s1815_s3 = sand.u32 1, %s1663_s10  }
  0x3a   : > { %s1459_s7 = sshll.u32 %s1815_s3, 10  ;;  %s156_s8 = scalar_lea.sflag [#allocation3], %s1815_s3 }
  0x3b   : > { %s1821_s15 = scalar_lea.vmem [#allocation2], %s1459_s7 }
  0x3c   : > { %1650 = dma.done.wait (%p1750_p8), %s156_s8, 16384  }
  0x3d   : > { %1652 = vsyncadd (%p1750_p8), %s156_s8, 4294950912  ;;  %v1684_v0 = vmov 0   ;;  %v710_v1 = vld [vmem:[%s3195_s1 + $0x10] sm:$0xff]  ;;  %v708_v2 = vld [vmem:[%s3195_s1] sm:$0xff]  ;;  %s2636_s20 = scalar_lea.vmem [#allocation5], %s1459_s7  ;;  %s1467_s7 = sshll.u32 %s1671_s12, 14 }
  0x3e   : > { %1536 = vset.pattern.permute.xlu1 %v1684_v0  ;;  %1535 = vset.pattern.permute.xlu0 %v1684_v0  ;;  %v711_v3 = vld [vmem:[%s3195_s1 + $0x18] sm:$0xff]  ;;  %v709_v4 = vld [vmem:[%s3195_s1 + $0x8] sm:$0xff]  ;;  %v712_v6 = vld [vmem:[%s3195_s1 + $0x20] sm:$0xff]  ;;  %s3139_s27 = scalar_lea.hbm %s3196_s2, %s1467_s7  ;;  %s1349_s12 = scalar_lea.sflag [#allocation4], %s1815_s3 }
  0x3f   : > { %784 = vperm.xlu1 %1536, %v710_v1   ;;  %774 = vperm.xlu0 %1535, %v708_v2   ;;  %v713_v5 = vld [vmem:[%s3195_s1 + $0x28] sm:$0xff]  ;;  %v715_v7 = vld [vmem:[%s3195_s1 + $0x38] sm:$0xff]  ;;  %v714_v8 = vld [vmem:[%s3195_s1 + $0x30] sm:$0xff]  ;;  %p3450_p9 = scmp.ne.s32.totalorder %s3282_s22, 0  ;;  %s1685_s29 = smov [#allocation5]  }
  0x40   : > { %v717_v9 = vld [vmem:[%s3195_s1 + $0x48] sm:$0xff]  ;;  %v716_v10 = vld [vmem:[%s3195_s1 + $0x40] sm:$0xff]  ;;  %v719_v11 = vld [vmem:[%s3195_s1 + $0x58] sm:$0xff]  ;;  %s1601_s8 = sshll.u32 %s1685_s29, 4  ;;  %s1602_s8 = int_to_ptr.vmem [resolvable:$false] %s1601_s8 }
  0x41   : > { %v718_v12 = vld [vmem:[%s3195_s1 + $0x50] sm:$0xff]  ;;  %v721_v13 = vld [vmem:[%s3195_s1 + $0x68] sm:$0xff]  ;;  %v720_v14 = vld [vmem:[%s3195_s1 + $0x60] sm:$0xff]  ;;  %s1603_s30 = scalar_lea.vmem %s1602_s8, 32768 }
  0x42   : > { %v182_v15 = vld [vmem:[%s1821_s15] sm:$0xff]  ;;  %v183_v16 = vld [vmem:[%s1821_s15 + $0x8] sm:$0xff]  ;;  %v184_v17 = vld [vmem:[%s1821_s15 + $0x10] sm:$0xff] }
  0x43   : > { %789 = vperm.xlu1 %1536, %v711_v3   ;;  %779 = vperm.xlu0 %1535, %v709_v4   ;;  %v185_v18 = vld [vmem:[%s1821_s15 + $0x18] sm:$0xff]  ;;  %v186_v19 = vld [vmem:[%s1821_s15 + $0x20] sm:$0xff]  ;;  %v310_v20 = vmul.f32 %v182_v15, %v182_v15  ;;  %v188_v21 = vld [vmem:[%s1821_s15 + $0x30] sm:$0xff]  ;;  %v311_v22 = vmul.f32 %v183_v16, %v183_v16  ;;  %v312_v23 = vmul.f32 %v184_v17, %v184_v17 }
  0x44   : > { %v313_v24 = vmul.f32 %v185_v18, %v185_v18  ;;  %v187_v25 = vld [vmem:[%s1821_s15 + $0x28] sm:$0xff]  ;;  %v314_v26 = vmul.f32 %v186_v19, %v186_v19  ;;  %v190_v27 = vld [vmem:[%s1821_s15 + $0x40] sm:$0xff]  ;;  %v723_v28 = vld [vmem:[%s3195_s1 + $0x78] sm:$0xff]  ;;  %v316_v30 = vmul.f32 %v188_v21, %v188_v21 }
  0x45   : > { %v722_v29 = vld [vmem:[%s3195_s1 + $0x70] sm:$0xff]  ;;  %v438_v31 = vadd.f32 %v312_v23, %v310_v20  ;;  %v315_v33 = vmul.f32 %v187_v25, %v187_v25  ;;  %v189_v35 = vld [vmem:[%s1821_s15 + $0x38] sm:$0xff]  ;;  %v318_v36 = vmul.f32 %v190_v27, %v190_v27  ;;  %v194_v38 = vld [vmem:[%s1821_s15 + $0x60] sm:$0xff] }
  0x46   : > { %v1884_v32 = vld [vmem:[%s1821_s15 + $0x50] sm:$0xff]  ;;  %v507_v34 = vadd.f32 %v313_v24, %v311_v22  ;;  %v725_v39 = vld [vmem:[%s3195_s1 + $0x88] sm:$0xff]  ;;  %v724_v40 = vld [vmem:[%s3195_s1 + $0x80] sm:$0xff]  ;;  %v317_v44 = vmul.f32 %v189_v35, %v189_v35  ;;  %v322_v47 = vmul.f32 %v194_v38, %v194_v38 }
  0x47   : > { %799 = vperm.xlu1 %1536, %v713_v5   ;;  %794 = vperm.xlu0 %1535, %v712_v6   ;;  %v439_v37 = vadd.f32 %v438_v31, %v314_v26  ;;  %v320_v41 = vmul.f32 %v1884_v32, %v1884_v32  ;;  %v1897_v43 = vld [vmem:[%s1821_s15 + $0x70] sm:$0xff]  ;;  %v191_v46 = vld [vmem:[%s1821_s15 + $0x48] sm:$0xff]  ;;  %v1901_v49 = vld [vmem:[%s1821_s15 + $0x80] sm:$0xff] }
  0x48   : > { %v508_v45 = vadd.f32 %v507_v34, %v315_v33  ;;  %v727_v50 = vld [vmem:[%s3195_s1 + $0x98] sm:$0xff]  ;;  %v726_v51 = vld [vmem:[%s3195_s1 + $0x90] sm:$0xff]  ;;  %v324_v52 = vmul.f32 %v1897_v43, %v1897_v43  ;;  %v319_v55 = vmul.f32 %v191_v46, %v191_v46  ;;  %v326_v58 = vmul.f32 %v1901_v49, %v1901_v49  ;;  %v1918_v60 = vld [vmem:[%s1821_s15 + $0xa0] sm:$0xff] }
  0x49   : > { %v440_v42 = vadd.f32 %v439_v37, %v316_v30  ;;  %v1912_v54 = vld [vmem:[%s1821_s15 + $0x90] sm:$0xff]  ;;  %v193_v57 = vld [vmem:[%s1821_s15 + $0x58] sm:$0xff]  ;;  %v729_v61 = vld [vmem:[%s3195_s1 + $0xa8] sm:$0xff]  ;;  %v330_v5 = vmul.f32 %v1918_v60, %v1918_v60 }
  0x4a   : > { %v509_v56 = vadd.f32 %v508_v45, %v317_v44  ;;  %v728_v62 = vld [vmem:[%s3195_s1 + $0xa0] sm:$0xff]  ;;  %v328_v63 = vmul.f32 %v1912_v54, %v1912_v54  ;;  %v1929_v1 = vld [vmem:[%s1821_s15 + $0xb0] sm:$0xff]  ;;  %v321_v2 = vmul.f32 %v193_v57, %v193_v57  ;;  %v195_v4 = vld [vmem:[%s1821_s15 + $0x68] sm:$0xff] }
  0x4b   : > { %809 = vperm.xlu1 %1536, %v715_v7   ;;  %804 = vperm.xlu0 %1535, %v714_v8   ;;  %v441_v48 = vadd.f32 %v440_v42, %v318_v36  ;;  %v1935_v7 = vld [vmem:[%s1821_s15 + $0xc0] sm:$0xff]  ;;  %v731_v8 = vld [vmem:[%s3195_s1 + $0xb8] sm:$0xff]  ;;  %v733_v19 = vld [vmem:[%s3195_s1 + $0xc8] sm:$0xff] }
  0x4c   : > { %v510_v3 = vadd.f32 %v509_v56, %v319_v55  ;;  %v197_v15 = vld [vmem:[%s1821_s15 + $0x78] sm:$0xff]  ;;  %v334_v16 = vmul.f32 %v1935_v7, %v1935_v7  ;;  %v1952_v18 = vld [vmem:[%s1821_s15 + $0xe0] sm:$0xff]  ;;  %v1963_v23 = vld [vmem:[%s1821_s15 + $0xf0] sm:$0xff] }
  0x4d   : > { %v442_v53 = vadd.f32 %v441_v48, %v320_v41  ;;  %v732_v20 = vld [vmem:[%s3195_s1 + $0xc0] sm:$0xff]  ;;  %v325_v24 = vmul.f32 %v197_v15, %v197_v15  ;;  %v199_v26 = vld [vmem:[%s1821_s15 + $0x88] sm:$0xff]  ;;  %v338_v27 = vmul.f32 %v1952_v18, %v1952_v18  ;;  %v735_v30 = vld [vmem:[%s3195_s1 + $0xd8] sm:$0xff]  ;;  %v340_v33 = vmul.f32 %v1963_v23, %v1963_v23 }
  0x4e   : > { %v734_v31 = vld [vmem:[%s3195_s1 + $0xd0] sm:$0xff]  ;;  %v327_v36 = vmul.f32 %v199_v26, %v199_v26  ;;  %v201_v38 = vld [vmem:[%s1821_s15 + $0x98] sm:$0xff]  ;;  %v1986_v41 = vld [vmem:[%s1821_s15 + $0x120] sm:$0xff] }
  0x4f   : > { %819 = vperm.xlu1 %1536, %v717_v9   ;;  %814 = vperm.xlu0 %1535, %v716_v10   ;;  %v443_v59 = vadd.f32 %v442_v53, %v322_v47  ;;  %v730_v9 = vld [vmem:[%s3195_s1 + $0xb0] sm:$0xff]  ;;  %v332_v10 = vmul.f32 %v1929_v1, %v1929_v1  ;;  %v737_v42 = vld [vmem:[%s3195_s1 + $0xe8] sm:$0xff]  ;;  %v736_v44 = vld [vmem:[%s3195_s1 + $0xe0] sm:$0xff]  ;;  %v329_v48 = vmul.f32 %v201_v38, %v201_v38 }
  0x50   : > { %v1980_v35 = vld [vmem:[%s1821_s15 + $0x110] sm:$0xff]  ;;  %v2003_v55 = vld [vmem:[%s1821_s15 + $0x140] sm:$0xff]  ;;  %v739_v56 = vld [vmem:[%s3195_s1 + $0xf8] sm:$0xff] }
  0x51   : > { %v444_v0 = vadd.f32 %v443_v59, %v324_v52  ;;  %v344_v45 = vmul.f32 %v1980_v35, %v1980_v35  ;;  %v1997_v47 = vld [vmem:[%s1821_s15 + $0x130] sm:$0xff]  ;;  %v346_v52 = vmul.f32 %v1986_v41, %v1986_v41 }
  0x52   : > { %v738_v57 = vld [vmem:[%s3195_s1 + $0xf0] sm:$0xff]  ;;  %v348_v59 = vmul.f32 %v1997_v47, %v1997_v47 }
  0x53   : > { %829 = vperm.xlu1 %1536, %v719_v11   ;;  %824 = vperm.xlu0 %1535, %v718_v12   ;;  %v445_v6 = vadd.f32 %v444_v0, %v326_v58  ;;  %v1946_v12 = vld [vmem:[%s1821_s15 + $0xd0] sm:$0xff]  ;;  %v205_v58 = vld [vmem:[%s1821_s15 + $0xb8] sm:$0xff] }
  0x54   : > { %v336_v21 = vmul.f32 %v1946_v12, %v1946_v12  ;;  %v742_v26 = vld [vmem:[%s3195_s1 + $0x110] sm:$0xff] }
  0x55   : > { %v446_v11 = vadd.f32 %v445_v6, %v328_v63  ;;  %v333_v6 = vmul.f32 %v205_v58, %v205_v58 }
  0x57   : > { %839 = vperm.xlu1 %1536, %v721_v13   ;;  %834 = vperm.xlu0 %1535, %v720_v14   ;;  %v323_v13 = vmul.f32 %v195_v4, %v195_v4  ;;  %v511_v14 = vadd.f32 %v510_v3, %v321_v2  ;;  %v447_v17 = vadd.f32 %v446_v11, %v330_v5  ;;  %v207_v2 = vld [vmem:[%s1821_s15 + $0xc8] sm:$0xff]  ;;  %v2021_v5 = vld [vmem:[%s1821_s15 + $0x160] sm:$0xff] }
  0x58   : > { %v350_v3 = vmul.f32 %v2003_v55, %v2003_v55  ;;  %v335_v15 = vmul.f32 %v207_v2, %v207_v2  ;;  %v746_v2 = vld [vmem:[%s3195_s1 + $0x130] sm:$0xff] }
  0x59   : > { %v448_v22 = vadd.f32 %v447_v17, %v332_v10  ;;  %v512_v25 = vadd.f32 %v511_v14, %v323_v13  ;;  %v209_v10 = vld [vmem:[%s1821_s15 + $0xd8] sm:$0xff]  ;;  %v2033_v14 = vld [vmem:[%s1821_s15 + $0x170] sm:$0xff]  ;;  %v211_v17 = vld [vmem:[%s1821_s15 + $0xe8] sm:$0xff] }
  0x5b   : > { %849 = vperm.xlu1 %1536, %v723_v28   ;;  %844 = vperm.xlu0 %1535, %v722_v29   ;;  %v449_v28 = vadd.f32 %v448_v22, %v334_v16  ;;  %v1969_v29 = vld [vmem:[%s1821_s15 + $0x100] sm:$0xff]  ;;  %v513_v37 = vadd.f32 %v512_v25, %v325_v24  ;;  %v337_v22 = vmul.f32 %v209_v10, %v209_v10  ;;  %v743_v25 = vld [vmem:[%s3195_s1 + $0x118] sm:$0xff] }
  0x5d   : > { %v450_v34 = vadd.f32 %v449_v28, %v336_v21  ;;  %v2039_v21 = vld [vmem:[%s1821_s15 + $0x180] sm:$0xff]  ;;  %v356_v28 = vmul.f32 %v2033_v14, %v2033_v14 }
  0x5f   : > { %859 = vperm.xlu1 %1536, %v725_v39   ;;  %854 = vperm.xlu0 %1535, %v724_v40   ;;  %v342_v39 = vmul.f32 %v1969_v29, %v1969_v29  ;;  %v451_v40 = vadd.f32 %v450_v34, %v338_v27  ;;  %v213_v27 = vld [vmem:[%s1821_s15 + $0xf8] sm:$0xff] }
  0x61   : > { %v452_v46 = vadd.f32 %v451_v40, %v340_v33  ;;  %v339_v33 = vmul.f32 %v211_v17, %v211_v17  ;;  %v341_v40 = vmul.f32 %v213_v27, %v213_v27  ;;  %v2113_v27 = vld [vmem:[%s1821_s15 + $0x1f0] sm:$0xff] }
  0x62   : > { %3291 = vst [vmem:[#allocation13_spill] sm:$0xff] %v2113_v27 }
  0x63   : > { %869 = vperm.xlu1 %1536, %v727_v50   ;;  %864 = vperm.xlu0 %1535, %v726_v51   ;;  %v514_v50 = vadd.f32 %v513_v37, %v327_v36  ;;  %v203_v51 = vld [vmem:[%s1821_s15 + $0xa8] sm:$0xff]  ;;  %v453_v53 = vadd.f32 %v452_v46, %v342_v39  ;;  %v358_v37 = vmul.f32 %v2039_v21, %v2039_v21  ;;  %v2057_v39 = vld [vmem:[%s1821_s15 + $0x1a0] sm:$0xff]  ;;  %v217_v46 = vld [vmem:[%s1821_s15 + $0x118] sm:$0xff] }
  0x64   : > { %v331_v63 = vmul.f32 %v203_v51, %v203_v51  ;;  %v215_v36 = vld [vmem:[%s1821_s15 + $0x108] sm:$0xff]  ;;  %v2069_v51 = vld [vmem:[%s1821_s15 + $0x1b0] sm:$0xff] }
  0x65   : > { %v515_v0 = vadd.f32 %v514_v50, %v329_v48 }
  0x67   : > { %879 = vperm.xlu1 %1536, %v729_v61   ;;  %874 = vperm.xlu0 %1535, %v728_v62   ;;  %v454_v61 = vadd.f32 %v453_v53, %v344_v45  ;;  %v2015_v62 = vld [vmem:[%s1821_s15 + $0x150] sm:$0xff]  ;;  %v516_v16 = vadd.f32 %v515_v0, %v331_v63  ;;  %v744_v45 = vld [vmem:[%s3195_s1 + $0x120] sm:$0xff]  ;;  %v747_v0 = vld [vmem:[%s3195_s1 + $0x138] sm:$0xff] }
  0x68   : > { %v352_v11 = vmul.f32 %v2015_v62, %v2015_v62 }
  0x69   : > { %v455_v4 = vadd.f32 %v454_v61, %v346_v52  ;;  %v517_v24 = vadd.f32 %v516_v16, %v333_v6  ;;  %v343_v52 = vmul.f32 %v215_v36, %v215_v36  ;;  %v345_v61 = vmul.f32 %v217_v46, %v217_v46  ;;  %v2097_v16 = vld [vmem:[%s1821_s15 + $0x1e0] sm:$0xff] }
  0x6a   : > { %3289 = vst [vmem:[#allocation11_spill] sm:$0xff] %v2097_v16  ;;  %v372_v46 = vmul.f32 %v2113_v27, %v2113_v27  ;;  %v1545_v27 = vld [vmem:[%s1821_s15 + $0x40] sm:$0xff] }
  0x6b   : > { %889 = vperm.xlu1 %1536, %v731_v8   ;;  %884 = vperm.xlu0 %1535, %v730_v9   ;;  %v741_v8 = vld [vmem:[%s3195_s1 + $0x108] sm:$0xff]  ;;  %v740_v9 = vld [vmem:[%s3195_s1 + $0x100] sm:$0xff]  ;;  %v456_v13 = vadd.f32 %v455_v4, %v348_v59  ;;  %v518_v34 = vadd.f32 %v517_v24, %v335_v15  ;;  %v364_v4 = vmul.f32 %v2069_v51, %v2069_v51  ;;  %v2108_v24 = vld [vmem:[%s1821_s15 + $0x158] sm:$0xff] }
  0x6c   : > { %v2075_v59 = vld [vmem:[%s1821_s15 + $0x1c0] sm:$0xff]  ;;  %3290 = vst [vmem:[#allocation12_spill] sm:$0xff] %v2108_v24 }
  0x6d   : > { %3286 = vst [vmem:[#allocation8_spill] sm:$0xff] %v2075_v59 }
  0x6f   : > { %899 = vperm.xlu1 %1536, %v733_v19   ;;  %894 = vperm.xlu0 %1535, %v732_v20   ;;  %v354_v19 = vmul.f32 %v2021_v5, %v2021_v5  ;;  %v457_v20 = vadd.f32 %v456_v13, %v350_v3  ;;  %v2084_v3 = vld [vmem:[%s1821_s15 + $0x138] sm:$0xff]  ;;  %v366_v13 = vmul.f32 %v2075_v59, %v2075_v59 }
  0x70   : > { %3287 = vst [vmem:[#allocation9_spill] sm:$0xff] %v2084_v3  ;;  %v349_v17 = vmul.f32 %v2084_v3, %v2084_v3 }
  0x73   : > { %909 = vperm.xlu1 %1536, %v735_v30   ;;  %904 = vperm.xlu0 %1535, %v734_v31   ;;  %v458_v30 = vadd.f32 %v457_v20, %v352_v11  ;;  %v2051_v31 = vld [vmem:[%s1821_s15 + $0x190] sm:$0xff]  ;;  %v2092_v11 = vld [vmem:[%s1821_s15 + $0x148] sm:$0xff] }
  0x74   : > { %v360_v48 = vmul.f32 %v2051_v31, %v2051_v31  ;;  %3288 = vst [vmem:[#allocation10_spill] sm:$0xff] %v2092_v11  ;;  %v749_v20 = vld [vmem:[%s3195_s1 + $0x148] sm:$0xff] }
  0x75   : > { %v459_v38 = vadd.f32 %v458_v30, %v354_v19 }
  0x77   : > { %919 = vperm.xlu1 %1536, %v737_v42   ;;  %914 = vperm.xlu0 %1535, %v736_v44   ;;  %v519_v42 = vadd.f32 %v518_v34, %v337_v22  ;;  %v745_v44 = vld [vmem:[%s3195_s1 + $0x128] sm:$0xff]  ;;  %v460_v50 = vadd.f32 %v459_v38, %v356_v28  ;;  %v748_v22 = vld [vmem:[%s3195_s1 + $0x140] sm:$0xff]  ;;  %v351_v28 = vmul.f32 %v2092_v11, %v2092_v11 }
  0x78   : > { %v370_v34 = vmul.f32 %v2097_v16, %v2097_v16  ;;  %v353_v38 = vmul.f32 %v2108_v24, %v2108_v24  ;;  %v1544_v16 = vld [vmem:[%s1821_s15 + $0x10] sm:$0xff] }
  0x79   : > { %v520_v53 = vadd.f32 %v519_v42, %v339_v33  ;;  %v461_v58 = vadd.f32 %v460_v50, %v358_v37  ;;  %v2118_v33 = vld [vmem:[%s1821_s15 + $0x168] sm:$0xff]  ;;  %v2123_v37 = vld [vmem:[%s1821_s15 + $0x200] sm:$0xff]  ;;  %v751_v42 = vld [vmem:[%s3195_s1 + $0x158] sm:$0xff] }
  0x7a   : > { %3292 = vst [vmem:[#allocation14_spill] sm:$0xff] %v2118_v33  ;;  %3293 = vst [vmem:[#allocation15_spill] sm:$0xff] %v2123_v37  ;;  %v2139_v50 = vld [vmem:[%s1821_s15 + $0x210] sm:$0xff] }
  0x7b   : > { %929 = vperm.xlu1 %1536, %v739_v56   ;;  %924 = vperm.xlu0 %1535, %v738_v57   ;;  %v219_v56 = vld [vmem:[%s1821_s15 + $0x128] sm:$0xff]  ;;  %v362_v57 = vmul.f32 %v2057_v39, %v2057_v39  ;;  %v521_v63 = vadd.f32 %v520_v53, %v341_v40  ;;  %v462_v6 = vadd.f32 %v461_v58, %v360_v48 }
  0x7c   : > { %3295 = vst [vmem:[#allocation17_spill] sm:$0xff] %v2139_v50 }
  0x7d   : > { %v522_v10 = vadd.f32 %v521_v63, %v343_v52  ;;  %v463_v15 = vadd.f32 %v462_v6, %v362_v57  ;;  %v355_v52 = vmul.f32 %v2118_v33, %v2118_v33  ;;  %v374_v57 = vmul.f32 %v2123_v37, %v2123_v37  ;;  %v2160_v6 = vld [vmem:[%s1821_s15 + $0x198] sm:$0xff]  ;;  %v1543_v37 = vld [vmem:[%s1821_s15 + $0x30] sm:$0xff] }
  0x7e   : > { %3298 = vst [vmem:[#allocation20_spill] sm:$0xff] %v2160_v6 }
  0x7f   : > { %939 = vperm.xlu1 %1536, %v741_v8   ;;  %934 = vperm.xlu0 %1535, %v740_v9   ;;  %v2089_v8 = vld [vmem:[%s1821_s15 + $0x1d0] sm:$0xff]  ;;  %v347_v9 = vmul.f32 %v219_v56, %v219_v56  ;;  %v523_v19 = vadd.f32 %v522_v10, %v345_v61  ;;  %v2144_v56 = vld [vmem:[%s1821_s15 + $0x188] sm:$0xff]  ;;  %v2149_v61 = vld [vmem:[%s1821_s15 + $0x220] sm:$0xff] }
  0x80   : > { %3296 = vst [vmem:[#allocation18_spill] sm:$0xff] %v2144_v56  ;;  %3297 = vst [vmem:[#allocation19_spill] sm:$0xff] %v2149_v61 }
  0x81   : > { %v524_v30 = vadd.f32 %v523_v19, %v347_v9  ;;  %v376_v9 = vmul.f32 %v2139_v50, %v2139_v50  ;;  %v2170_v19 = vld [vmem:[%s1821_s15 + $0x1a8] sm:$0xff] }
  0x82   : > { %3300 = vst [vmem:[#allocation22_spill] sm:$0xff] %v2170_v19 }
  0x83   : > { %949 = vperm.xlu1 %1536, %v743_v25   ;;  %944 = vperm.xlu0 %1535, %v742_v26   ;;  %v368_v25 = vmul.f32 %v2089_v8, %v2089_v8  ;;  %v464_v26 = vadd.f32 %v463_v15, %v364_v4  ;;  %v525_v40 = vadd.f32 %v524_v30, %v349_v17  ;;  %v752_v4 = vld [vmem:[%s3195_s1 + $0x160] sm:$0xff]  ;;  %v755_v30 = vld [vmem:[%s3195_s1 + $0x178] sm:$0xff] }
  0x84   : > { %v359_v15 = vmul.f32 %v2144_v56, %v2144_v56 }
  0x85   : > { %v465_v36 = vadd.f32 %v464_v26, %v366_v13  ;;  %v526_v53 = vadd.f32 %v525_v40, %v351_v28  ;;  %v2165_v13 = vld [vmem:[%s1821_s15 + $0x230] sm:$0xff]  ;;  %v361_v26 = vmul.f32 %v2160_v6, %v2160_v6  ;;  %v2516_v6 = vld [vmem:[%s1821_s15 + $0x368] sm:$0xff] }
  0x86   : > { %3299 = vst [vmem:[#allocation21_spill] sm:$0xff] %v2165_v13  ;;  %3355 = vst [vmem:[#allocation77_spill] sm:$0xff] %v2516_v6 }
  0x87   : > { %959 = vperm.xlu1 %1536, %v745_v44   ;;  %954 = vperm.xlu0 %1535, %v744_v45   ;;  %v750_v44 = vld [vmem:[%s3195_s1 + $0x150] sm:$0xff]  ;;  %v2134_v45 = vld [vmem:[%s1821_s15 + $0x178] sm:$0xff]  ;;  %v466_v48 = vadd.f32 %v465_v36, %v368_v25  ;;  %v2175_v25 = vld [vmem:[%s1821_s15 + $0x240] sm:$0xff] }
  0x88   : > { %3294 = vst [vmem:[#allocation16_spill] sm:$0xff] %v2134_v45  ;;  %v357_v63 = vmul.f32 %v2134_v45, %v2134_v45  ;;  %3301 = vst [vmem:[#allocation23_spill] sm:$0xff] %v2175_v25  ;;  %v2186_v36 = vld [vmem:[%s1821_s15 + $0x1b8] sm:$0xff] }
  0x89   : > { %v467_v58 = vadd.f32 %v466_v48, %v370_v34  ;;  %v754_v34 = vld [vmem:[%s3195_s1 + $0x170] sm:$0xff]  ;;  %3302 = vst [vmem:[#allocation24_spill] sm:$0xff] %v2186_v36  ;;  %v2196_v48 = vld [vmem:[%s1821_s15 + $0x1c8] sm:$0xff] }
  0x8a   : > { %3304 = vst [vmem:[#allocation26_spill] sm:$0xff] %v2196_v48 }
  0x8b   : > { %969 = vperm.xlu1 %1536, %v747_v0   ;;  %964 = vperm.xlu0 %1535, %v746_v2   ;;  %v527_v0 = vadd.f32 %v526_v53, %v353_v38  ;;  %v753_v2 = vld [vmem:[%s3195_s1 + $0x168] sm:$0xff]  ;;  %v468_v10 = vadd.f32 %v467_v58, %v372_v46  ;;  %v380_v38 = vmul.f32 %v2165_v13, %v2165_v13 }
  0x8c   : > { %v365_v58 = vmul.f32 %v2186_v36, %v2186_v36  ;;  %v2492_v36 = vld [vmem:[%s1821_s15 + $0x348] sm:$0xff] }
  0x8d   : > { %v528_v17 = vadd.f32 %v527_v0, %v355_v52  ;;  %v382_v52 = vmul.f32 %v2175_v25, %v2175_v25  ;;  %v757_v0 = vld [vmem:[%s3195_s1 + $0x188] sm:$0xff]  ;;  %3351 = vst [vmem:[#allocation73_spill] sm:$0xff] %v2492_v36 }
  0x8f   : > { %979 = vperm.xlu1 %1536, %v749_v20   ;;  %974 = vperm.xlu0 %1535, %v748_v22   ;;  %v378_v20 = vmul.f32 %v2149_v61, %v2149_v61  ;;  %v469_v22 = vadd.f32 %v468_v10, %v374_v57  ;;  %v529_v28 = vadd.f32 %v528_v17, %v357_v63  ;;  %v258_v57 = vld [vmem:[%s1821_s15 + $0x260] sm:$0xff] }
  0x90   : > { %v367_v17 = vmul.f32 %v2196_v48, %v2196_v48 }
  0x91   : > { %v470_v40 = vadd.f32 %v469_v22, %v376_v9  ;;  %v530_v46 = vadd.f32 %v529_v28, %v359_v15  ;;  %v2215_v15 = vld [vmem:[%s1821_s15 + $0x270] sm:$0xff]  ;;  %v2220_v22 = vld [vmem:[%s1821_s15 + $0x1e8] sm:$0xff] }
  0x92   : > { %3306 = vst [vmem:[#allocation28_spill] sm:$0xff] %v2215_v15  ;;  %3307 = vst [vmem:[#allocation29_spill] sm:$0xff] %v2220_v22 }
  0x93   : > { %989 = vperm.xlu1 %1536, %v751_v42   ;;  %984 = vperm.xlu0 %1535, %v750_v44   ;;  %v2191_v42 = vld [vmem:[%s1821_s15 + $0x250] sm:$0xff]  ;;  %v363_v44 = vmul.f32 %v2170_v19, %v2170_v19  ;;  %v471_v53 = vadd.f32 %v470_v40, %v378_v20  ;;  %v531_v63 = vadd.f32 %v530_v46, %v361_v26  ;;  %v759_v40 = vld [vmem:[%s3195_s1 + $0x198] sm:$0xff] }
  0x94   : > { %3303 = vst [vmem:[#allocation25_spill] sm:$0xff] %v2191_v42  ;;  %v384_v9 = vmul.f32 %v2191_v42, %v2191_v42  ;;  %v386_v26 = vmul.f32 %v258_v57, %v258_v57  ;;  %v2234_v46 = vld [vmem:[%s1821_s15 + $0x1f8] sm:$0xff]  ;;  %v2239_v57 = vld [vmem:[%s1821_s15 + $0x290] sm:$0xff] }
  0x95   : > { %v472_v10 = vadd.f32 %v471_v53, %v380_v38  ;;  %v532_v20 = vadd.f32 %v531_v63, %v363_v44  ;;  %v758_v44 = vld [vmem:[%s3195_s1 + $0x190] sm:$0xff]  ;;  %3309 = vst [vmem:[#allocation31_spill] sm:$0xff] %v2234_v46  ;;  %3310 = vst [vmem:[#allocation32_spill] sm:$0xff] %v2239_v57 }
  0x97   : > { %999 = vperm.xlu1 %1536, %v753_v2   ;;  %994 = vperm.xlu0 %1535, %v752_v4   ;;  %v756_v2 = vld [vmem:[%s3195_s1 + $0x180] sm:$0xff]  ;;  %v2210_v4 = vld [vmem:[%s1821_s15 + $0x1d8] sm:$0xff]  ;;  %v473_v28 = vadd.f32 %v472_v10, %v382_v52  ;;  %v533_v38 = vadd.f32 %v532_v20, %v365_v58  ;;  %v388_v52 = vmul.f32 %v2215_v15, %v2215_v15 }
  0x98   : > { %3305 = vst [vmem:[#allocation27_spill] sm:$0xff] %v2210_v4  ;;  %v371_v58 = vmul.f32 %v2220_v22, %v2220_v22  ;;  %v2249_v20 = vld [vmem:[%s1821_s15 + $0x2a0] sm:$0xff]  ;;  %v2260_v15 = vld [vmem:[%s1821_s15 + $0x218] sm:$0xff] }
  0x99   : > { %v474_v53 = vadd.f32 %v473_v28, %v384_v9  ;;  %v534_v63 = vadd.f32 %v533_v38, %v367_v17  ;;  %3312 = vst [vmem:[#allocation34_spill] sm:$0xff] %v2249_v20  ;;  %v373_v9 = vmul.f32 %v2234_v46, %v2234_v46  ;;  %v761_v17 = vld [vmem:[%s3195_s1 + $0x1a8] sm:$0xff]  ;;  %v760_v38 = vld [vmem:[%s3195_s1 + $0x1a0] sm:$0xff]  ;;  %3313 = vst [vmem:[#allocation35_spill] sm:$0xff] %v2260_v15 }
  0x9a   : > { %v2275_v46 = vld [vmem:[%s1821_s15 + $0x2c0] sm:$0xff] }
  0x9b   : > { %1009 = vperm.xlu1 %1536, %v755_v30   ;;  %1004 = vperm.xlu0 %1535, %v754_v34   ;;  %v2223_v30 = vld [vmem:[%s1821_s15 + $0x280] sm:$0xff]  ;;  %v369_v34 = vmul.f32 %v2210_v4, %v2210_v4  ;;  %v475_v10 = vadd.f32 %v474_v53, %v386_v26  ;;  %v392_v26 = vmul.f32 %v2239_v57, %v2239_v57  ;;  %v2286_v57 = vld [vmem:[%s1821_s15 + $0x238] sm:$0xff]  ;;  %v2468_v4 = vld [vmem:[%s1821_s15 + $0x328] sm:$0xff] }
  0x9c   : > { %3308 = vst [vmem:[#allocation30_spill] sm:$0xff] %v2223_v30  ;;  %3316 = vst [vmem:[#allocation38_spill] sm:$0xff] %v2275_v46 }
  0x9d   : > { %v535_v28 = vadd.f32 %v534_v63, %v369_v34  ;;  %v2270_v63 = vld [vmem:[%s1821_s15 + $0x228] sm:$0xff]  ;;  %3317 = vst [vmem:[#allocation39_spill] sm:$0xff] %v2286_v57  ;;  %3347 = vst [vmem:[#allocation69_spill] sm:$0xff] %v2468_v4 }
  0x9e   : > { %3315 = vst [vmem:[#allocation37_spill] sm:$0xff] %v2270_v63 }
  0x9f   : > { %1019 = vperm.xlu1 %1536, %v757_v0   ;;  %1014 = vperm.xlu0 %1535, %v756_v2   ;;  %v2244_v0 = vld [vmem:[%s1821_s15 + $0x208] sm:$0xff]  ;;  %v390_v2 = vmul.f32 %v2223_v30, %v2223_v30  ;;  %v536_v53 = vadd.f32 %v535_v28, %v371_v58  ;;  %v394_v30 = vmul.f32 %v2249_v20, %v2249_v20  ;;  %v763_v58 = vld [vmem:[%s3195_s1 + $0x1b8] sm:$0xff]  ;;  %v762_v28 = vld [vmem:[%s3195_s1 + $0x1b0] sm:$0xff] }
  0xa0   : > { %3311 = vst [vmem:[#allocation33_spill] sm:$0xff] %v2244_v0  ;;  %v375_v34 = vmul.f32 %v2244_v0, %v2244_v0  ;;  %v398_v20 = vmul.f32 %v2275_v46, %v2275_v46 }
  0xa3   : > { %1029 = vperm.xlu1 %1536, %v759_v40   ;;  %1024 = vperm.xlu0 %1535, %v758_v44   ;;  %v476_v40 = vadd.f32 %v475_v10, %v388_v52  ;;  %v2265_v44 = vld [vmem:[%s1821_s15 + $0x2b0] sm:$0xff]  ;;  %v377_v52 = vmul.f32 %v2260_v15, %v2260_v15  ;;  %v537_v10 = vadd.f32 %v536_v53, %v373_v9  ;;  %v2296_v53 = vld [vmem:[%s1821_s15 + $0x248] sm:$0xff]  ;;  %v2301_v15 = vld [vmem:[%s1821_s15 + $0x2e0] sm:$0xff] }
  0xa4   : > { %3314 = vst [vmem:[#allocation36_spill] sm:$0xff] %v2265_v44  ;;  %v379_v9 = vmul.f32 %v2270_v63, %v2270_v63  ;;  %3319 = vst [vmem:[#allocation41_spill] sm:$0xff] %v2296_v53  ;;  %v402_v46 = vmul.f32 %v2301_v15, %v2301_v15 }
  0xa5   : > { %v477_v22 = vadd.f32 %v476_v40, %v390_v2  ;;  %v396_v2 = vmul.f32 %v2265_v44, %v2265_v44  ;;  %v538_v40 = vadd.f32 %v537_v10, %v375_v34  ;;  %3320 = vst [vmem:[#allocation42_spill] sm:$0xff] %v2301_v15  ;;  %v765_v34 = vld [vmem:[%s3195_s1 + $0x1c8] sm:$0xff]  ;;  %v764_v10 = vld [vmem:[%s3195_s1 + $0x1c0] sm:$0xff]  ;;  %v2312_v44 = vld [vmem:[%s1821_s15 + $0x258] sm:$0xff] }
  0xa6   : > { %3321 = vst [vmem:[#allocation43_spill] sm:$0xff] %v2312_v44 }
  0xa7   : > { %1039 = vperm.xlu1 %1536, %v761_v17   ;;  %1034 = vperm.xlu0 %1535, %v760_v38   ;;  %v478_v17 = vadd.f32 %v477_v22, %v392_v26  ;;  %v2291_v38 = vld [vmem:[%s1821_s15 + $0x2d0] sm:$0xff]  ;;  %v381_v22 = vmul.f32 %v2286_v57, %v2286_v57  ;;  %v539_v26 = vadd.f32 %v538_v40, %v377_v52  ;;  %v2322_v40 = vld [vmem:[%s1821_s15 + $0x268] sm:$0xff]  ;;  %v2327_v57 = vld [vmem:[%s1821_s15 + $0x300] sm:$0xff] }
  0xa8   : > { %3318 = vst [vmem:[#allocation40_spill] sm:$0xff] %v2291_v38  ;;  %v383_v52 = vmul.f32 %v2296_v53, %v2296_v53  ;;  %3323 = vst [vmem:[#allocation45_spill] sm:$0xff] %v2322_v40  ;;  %v406_v15 = vmul.f32 %v2327_v57, %v2327_v57 }
  0xa9   : > { %v479_v0 = vadd.f32 %v478_v17, %v394_v30  ;;  %v400_v30 = vmul.f32 %v2291_v38, %v2291_v38  ;;  %v540_v17 = vadd.f32 %v539_v26, %v379_v9  ;;  %3324 = vst [vmem:[#allocation46_spill] sm:$0xff] %v2327_v57  ;;  %v767_v9 = vld [vmem:[%s3195_s1 + $0x1d8] sm:$0xff]  ;;  %v766_v26 = vld [vmem:[%s3195_s1 + $0x1d0] sm:$0xff] }
  0xaa   : > { %v2338_v38 = vld [vmem:[%s1821_s15 + $0x278] sm:$0xff] }
  0xab   : > { %1049 = vperm.xlu1 %1536, %v763_v58   ;;  %1044 = vperm.xlu0 %1535, %v762_v28   ;;  %v480_v58 = vadd.f32 %v479_v0, %v396_v2  ;;  %v2317_v28 = vld [vmem:[%s1821_s15 + $0x2f0] sm:$0xff]  ;;  %v385_v0 = vmul.f32 %v2312_v44, %v2312_v44  ;;  %v541_v2 = vadd.f32 %v540_v17, %v381_v22  ;;  %v2348_v17 = vld [vmem:[%s1821_s15 + $0x288] sm:$0xff]  ;;  %v2353_v44 = vld [vmem:[%s1821_s15 + $0x320] sm:$0xff] }
  0xac   : > { %3322 = vst [vmem:[#allocation44_spill] sm:$0xff] %v2317_v28  ;;  %3325 = vst [vmem:[#allocation47_spill] sm:$0xff] %v2338_v38  ;;  %v387_v22 = vmul.f32 %v2322_v40, %v2322_v40  ;;  %v410_v57 = vmul.f32 %v2353_v44, %v2353_v44 }
  0xad   : > { %v481_v63 = vadd.f32 %v480_v58, %v398_v20  ;;  %v404_v20 = vmul.f32 %v2317_v28, %v2317_v28  ;;  %v542_v58 = vadd.f32 %v541_v2, %v383_v52  ;;  %3327 = vst [vmem:[#allocation49_spill] sm:$0xff] %v2348_v17  ;;  %3328 = vst [vmem:[#allocation50_spill] sm:$0xff] %v2353_v44  ;;  %v769_v52 = vld [vmem:[%s3195_s1 + $0x1e8] sm:$0xff]  ;;  %v768_v2 = vld [vmem:[%s3195_s1 + $0x1e0] sm:$0xff] }
  0xae   : > { %v2364_v28 = vld [vmem:[%s1821_s15 + $0x298] sm:$0xff] }
  0xaf   : > { %1059 = vperm.xlu1 %1536, %v765_v34   ;;  %1054 = vperm.xlu0 %1535, %v764_v10   ;;  %v482_v34 = vadd.f32 %v481_v63, %v400_v30  ;;  %v2343_v10 = vld [vmem:[%s1821_s15 + $0x310] sm:$0xff]  ;;  %v389_v63 = vmul.f32 %v2338_v38, %v2338_v38  ;;  %v543_v30 = vadd.f32 %v542_v58, %v385_v0  ;;  %v2374_v58 = vld [vmem:[%s1821_s15 + $0x2a8] sm:$0xff]  ;;  %v2379_v38 = vld [vmem:[%s1821_s15 + $0x340] sm:$0xff] }
  0xb0   : > { %3326 = vst [vmem:[#allocation48_spill] sm:$0xff] %v2343_v10  ;;  %3329 = vst [vmem:[#allocation51_spill] sm:$0xff] %v2364_v28  ;;  %v391_v0 = vmul.f32 %v2348_v17, %v2348_v17  ;;  %v2390_v44 = vld [vmem:[%s1821_s15 + $0x2b8] sm:$0xff] }
  0xb1   : > { %v483_v53 = vadd.f32 %v482_v34, %v402_v46  ;;  %v408_v46 = vmul.f32 %v2343_v10, %v2343_v10  ;;  %v544_v34 = vadd.f32 %v543_v30, %v387_v22  ;;  %3331 = vst [vmem:[#allocation53_spill] sm:$0xff] %v2374_v58  ;;  %3332 = vst [vmem:[#allocation54_spill] sm:$0xff] %v2379_v38  ;;  %v771_v22 = vld [vmem:[%s3195_s1 + $0x1f8] sm:$0xff]  ;;  %v770_v30 = vld [vmem:[%s3195_s1 + $0x1f0] sm:$0xff] }
  0xb2   : > { %3333 = vst [vmem:[#allocation55_spill] sm:$0xff] %v2390_v44  ;;  %v414_v10 = vmul.f32 %v2379_v38, %v2379_v38 }
  0xb3   : > { %1069 = vperm.xlu1 %1536, %v767_v9   ;;  %1064 = vperm.xlu0 %1535, %v766_v26   ;;  %v484_v9 = vadd.f32 %v483_v53, %v404_v20  ;;  %v2369_v26 = vld [vmem:[%s1821_s15 + $0x330] sm:$0xff]  ;;  %v393_v53 = vmul.f32 %v2364_v28, %v2364_v28  ;;  %v545_v20 = vadd.f32 %v544_v34, %v389_v63  ;;  %v2400_v34 = vld [vmem:[%s1821_s15 + $0x2c8] sm:$0xff]  ;;  %v2405_v28 = vld [vmem:[%s1821_s15 + $0x360] sm:$0xff] }
  0xb4   : > { %3330 = vst [vmem:[#allocation52_spill] sm:$0xff] %v2369_v26  ;;  %v395_v63 = vmul.f32 %v2374_v58, %v2374_v58  ;;  %3335 = vst [vmem:[#allocation57_spill] sm:$0xff] %v2400_v34  ;;  %v2415_v58 = vld [vmem:[%s1821_s15 + $0x370] sm:$0xff] }
  0xb5   : > { %v485_v40 = vadd.f32 %v484_v9, %v406_v15  ;;  %v412_v15 = vmul.f32 %v2369_v26, %v2369_v26  ;;  %v546_v9 = vadd.f32 %v545_v20, %v391_v0  ;;  %3336 = vst [vmem:[#allocation58_spill] sm:$0xff] %v2405_v28  ;;  %v2410_v26 = vld [vmem:[%s1821_s15 + $0x2d8] sm:$0xff]  ;;  %3338 = vst [vmem:[#allocation60_spill] sm:$0xff] %v2415_v58 }
  0xb6   : > { %3337 = vst [vmem:[#allocation59_spill] sm:$0xff] %v2410_v26 }
  0xb7   : > { %1079 = vperm.xlu1 %1536, %v769_v52   ;;  %1074 = vperm.xlu0 %1535, %v768_v2   ;;  %v486_v52 = vadd.f32 %v485_v40, %v408_v46  ;;  %v2395_v2 = vld [vmem:[%s1821_s15 + $0x350] sm:$0xff]  ;;  %v397_v40 = vmul.f32 %v2390_v44, %v2390_v44  ;;  %v547_v46 = vadd.f32 %v546_v9, %v393_v53 }
  0xb8   : > { %3334 = vst [vmem:[#allocation56_spill] sm:$0xff] %v2395_v2  ;;  %v416_v0 = vmul.f32 %v2395_v2, %v2395_v2  ;;  %v418_v53 = vmul.f32 %v2405_v28, %v2405_v28  ;;  %v2429_v2 = vld [vmem:[%s1821_s15 + $0x380] sm:$0xff]  ;;  %v2439_v44 = vld [vmem:[%s1821_s15 + $0x390] sm:$0xff]  ;;  %v2444_v28 = vld [vmem:[%s1821_s15 + $0x308] sm:$0xff] }
  0xb9   : > { %v487_v17 = vadd.f32 %v486_v52, %v410_v57  ;;  %v399_v57 = vmul.f32 %v2400_v34, %v2400_v34  ;;  %v2422_v52 = vld [vmem:[%s1821_s15 + $0x2e8] sm:$0xff]  ;;  %3340 = vst [vmem:[#allocation62_spill] sm:$0xff] %v2429_v2  ;;  %v2434_v34 = vld [vmem:[%s1821_s15 + $0x2f8] sm:$0xff]  ;;  %3342 = vst [vmem:[#allocation64_spill] sm:$0xff] %v2439_v44 }
  0xba   : > { %3339 = vst [vmem:[#allocation61_spill] sm:$0xff] %v2422_v52  ;;  %3341 = vst [vmem:[#allocation63_spill] sm:$0xff] %v2434_v34 }
  0xbb   : > { %1089 = vperm.xlu1 %1536, %v771_v22   ;;  %1084 = vperm.xlu0 %1535, %v770_v30   ;;  %v488_v20 = vadd.f32 %v487_v17, %v412_v15  ;;  %v548_v22 = vadd.f32 %v547_v46, %v395_v63  ;;  %v401_v17 = vmul.f32 %v2410_v26, %v2410_v26 }
  0xbc   : > { %v420_v63 = vmul.f32 %v2415_v58, %v2415_v58  ;;  %3343 = vst [vmem:[#allocation65_spill] sm:$0xff] %v2444_v28  ;;  %v422_v26 = vmul.f32 %v2429_v2, %v2429_v2  ;;  %v2453_v58 = vld [vmem:[%s1821_s15 + $0x3a0] sm:$0xff] }
  0xbd   : > { %v489_v9 = vadd.f32 %v488_v20, %v414_v10  ;;  %v549_v15 = vadd.f32 %v548_v22, %v397_v40  ;;  %v403_v10 = vmul.f32 %v2422_v52, %v2422_v52  ;;  %3344 = vst [vmem:[#allocation66_spill] sm:$0xff] %v2453_v58  ;;  %v2458_v52 = vld [vmem:[%s1821_s15 + $0x318] sm:$0xff] }
  0xbe   : > { %v2419_v30 = vpop.permute.xlu1 %784  ;;  %v2426_v38 = vpop.permute.xlu0 %774  ;;  %3345 = vst [vmem:[#allocation67_spill] sm:$0xff] %v2458_v52 }
  0xbf   : > { %v490_v46 = vadd.f32 %v489_v9, %v416_v0  ;;  %v550_v20 = vadd.f32 %v549_v15, %v399_v57  ;;  %v405_v0 = vmul.f32 %v2434_v34, %v2434_v34  ;;  %v424_v57 = vmul.f32 %v2439_v44, %v2439_v44  ;;  %v2477_v44 = vld [vmem:[%s1821_s15 + $0x3c0] sm:$0xff] }
  0xc0   : > { %v426_v34 = vmul.f32 %v2453_v58, %v2453_v58  ;;  %3348 = vst [vmem:[#allocation70_spill] sm:$0xff] %v2477_v44 }
  0xc1   : > { %v491_v40 = vadd.f32 %v490_v46, %v418_v53  ;;  %v551_v9 = vadd.f32 %v550_v20, %v401_v17  ;;  %v2463_v53 = vld [vmem:[%s1821_s15 + $0x3b0] sm:$0xff]  ;;  %v407_v46 = vmul.f32 %v2444_v28, %v2444_v28  ;;  %v2482_v28 = vld [vmem:[%s1821_s15 + $0x338] sm:$0xff] }
  0xc2   : > { %v2448_v22 = vpop.permute.xlu1 %789  ;;  %v2450_v48 = vpop.permute.xlu0 %779  ;;  %3346 = vst [vmem:[#allocation68_spill] sm:$0xff] %v2463_v53  ;;  %3349 = vst [vmem:[#allocation71_spill] sm:$0xff] %v2482_v28 }
  0xc3   : > { %v492_v15 = vadd.f32 %v491_v40, %v420_v63  ;;  %v552_v2 = vadd.f32 %v551_v9, %v403_v10  ;;  %v409_v63 = vmul.f32 %v2458_v52, %v2458_v52  ;;  %v428_v10 = vmul.f32 %v2463_v53, %v2463_v53  ;;  %v2501_v53 = vld [vmem:[%s1821_s15 + $0x3e0] sm:$0xff] }
  0xc4   : > { %v430_v52 = vmul.f32 %v2477_v44, %v2477_v44  ;;  %3352 = vst [vmem:[#allocation74_spill] sm:$0xff] %v2501_v53  ;;  %v2511_v44 = vld [vmem:[%s1821_s15 + $0x3f0] sm:$0xff]  ;;  %v434_v33 = vmul.f32 %v2501_v53, %v2501_v53  ;;  %v419_v53 = vmul.f32 %v2516_v6, %v2516_v6 }
  0xc5   : > { %v493_v17 = vadd.f32 %v492_v15, %v422_v26  ;;  %v553_v40 = vadd.f32 %v552_v2, %v405_v0  ;;  %v2487_v26 = vld [vmem:[%s1821_s15 + $0x3d0] sm:$0xff]  ;;  %v411_v15 = vmul.f32 %v2468_v4, %v2468_v4  ;;  %v2506_v4 = vld [vmem:[%s1821_s15 + $0x358] sm:$0xff]  ;;  %3354 = vst [vmem:[#allocation76_spill] sm:$0xff] %v2511_v44 }
  0xc6   : > { %v2472_v20 = vpop.permute.xlu1 %799  ;;  %v2474_v19 = vpop.permute.xlu0 %794  ;;  %3350 = vst [vmem:[#allocation72_spill] sm:$0xff] %v2487_v26  ;;  %3353 = vst [vmem:[#allocation75_spill] sm:$0xff] %v2506_v4 }
  0xc7   : > { %v494_v9 = vadd.f32 %v493_v17, %v424_v57  ;;  %v554_v58 = vadd.f32 %v553_v40, %v407_v46  ;;  %v413_v57 = vmul.f32 %v2482_v28, %v2482_v28  ;;  %v432_v46 = vmul.f32 %v2487_v26, %v2487_v26  ;;  %v2527_v26 = vld [vmem:[%s1821_s15 + $0x378] sm:$0xff] }
  0xc8   : > { %3356 = vst [vmem:[#allocation78_spill] sm:$0xff] %v2527_v26 }
  0xc9   : > { %v495_v2 = vadd.f32 %v494_v9, %v426_v34  ;;  %v555_v17 = vadd.f32 %v554_v58, %v409_v63  ;;  %v415_v34 = vmul.f32 %v2492_v36, %v2492_v36 }
  0xca   : > { %v2496_v0 = vpop.permute.xlu1 %809  ;;  %v2498_v56 = vpop.permute.xlu0 %804 }
  0xcb   : > { %v496_v40 = vadd.f32 %v495_v2, %v428_v10  ;;  %v556_v9 = vadd.f32 %v555_v17, %v411_v15  ;;  %v417_v10 = vmul.f32 %v2506_v4, %v2506_v4  ;;  %v436_v15 = vmul.f32 %v2511_v44, %v2511_v44  ;;  %v2543_v4 = vld [vmem:[%s1821_s15 + $0x398] sm:$0xff] }
  0xcc   : > { %3358 = vst [vmem:[#allocation80_spill] sm:$0xff] %v2543_v4  ;;  %v425_v6 = vmul.f32 %v2543_v4, %v2543_v4 }
  0xcd   : > { %v497_v28 = vadd.f32 %v496_v40, %v430_v52  ;;  %v557_v2 = vadd.f32 %v556_v9, %v413_v57  ;;  %v2534_v40 = vld [vmem:[%s1821_s15 + $0x388] sm:$0xff]  ;;  %v421_v57 = vmul.f32 %v2527_v26, %v2527_v26 }
  0xce   : > { %v2520_v58 = vpop.permute.xlu1 %819  ;;  %v2522_v63 = vpop.permute.xlu0 %814  ;;  %3357 = vst [vmem:[#allocation79_spill] sm:$0xff] %v2534_v40 }
  0xcf   : > { %v498_v17 = vadd.f32 %v497_v28, %v432_v46  ;;  %v558_v52 = vadd.f32 %v557_v2, %v415_v34  ;;  %v423_v46 = vmul.f32 %v2534_v40, %v2534_v40  ;;  %v2548_v2 = vld [vmem:[%s1821_s15 + $0x3a8] sm:$0xff] }
  0xd0   : > { %3359 = vst [vmem:[#allocation81_spill] sm:$0xff] %v2548_v2 }
  0xd1   : > { %v499_v36 = vadd.f32 %v498_v17, %v434_v33  ;;  %v559_v9 = vadd.f32 %v558_v52, %v417_v10  ;;  %v2557_v52 = vld [vmem:[%s1821_s15 + $0x3b8] sm:$0xff] }
  0xd2   : > { %v2536_v45 = vpop.permute.xlu1 %829  ;;  %v2538_v11 = vpop.permute.xlu0 %824  ;;  %3360 = vst [vmem:[#allocation82_spill] sm:$0xff] %v2557_v52  ;;  %v429_v4 = vmul.f32 %v2557_v52, %v2557_v52  ;;  %v2585_v52 = vld [vmem:[%s1821_s15 + $0x3f8] sm:$0xff] }
  0xd3   : > { %v500_v28 = vadd.f32 %v499_v36, %v436_v15  ;;  %v560_v34 = vadd.f32 %v559_v9, %v419_v53  ;;  %v427_v15 = vmul.f32 %v2548_v2, %v2548_v2  ;;  %v2562_v9 = vld [vmem:[%s1821_s15 + $0x3c8] sm:$0xff]  ;;  %3364 = vst [vmem:[#allocation86_spill] sm:$0xff] %v2585_v52 }
  0xd4   : > { %3361 = vst [vmem:[#allocation83_spill] sm:$0xff] %v2562_v9 }
  0xd5   : > { %v501_v33 = vrot.slane %v500_v28, 4  ;;  %v561_v10 = vadd.f32 %v560_v34, %v421_v57  ;;  %v2571_v57 = vld [vmem:[%s1821_s15 + $0x3d8] sm:$0xff] }
  0xd6   : > { %v2550_v17 = vpop.permute.xlu1 %839  ;;  %v2552_v44 = vpop.permute.xlu0 %834  ;;  %3362 = vst [vmem:[#allocation84_spill] sm:$0xff] %v2571_v57  ;;  %v433_v42 = vmul.f32 %v2571_v57, %v2571_v57 }
  0xd7   : > { %v502_v36 = vadd.f32 %v501_v33, %v500_v28  ;;  %v562_v53 = vadd.f32 %v561_v10, %v423_v46  ;;  %v431_v28 = vmul.f32 %v2562_v9, %v2562_v9  ;;  %v2576_v46 = vld [vmem:[%s1821_s15 + $0x3e8] sm:$0xff]  ;;  %v437_v9 = vmul.f32 %v2585_v52, %v2585_v52 }
  0xd8   : > { %3363 = vst [vmem:[#allocation85_spill] sm:$0xff] %v2576_v46 }
  0xd9   : > { %v503_v40 = vrot.slane %v502_v36, 2  ;;  %v563_v3 = vadd.f32 %v562_v53, %v425_v6 }
  0xda   : > { %v2564_v26 = vpop.permute.xlu1 %849  ;;  %v2566_v24 = vpop.permute.xlu0 %844 }
  0xdb   : > { %v504_v34 = vadd.f32 %v503_v40, %v502_v36  ;;  %v564_v33 = vadd.f32 %v563_v3, %v427_v15  ;;  %v435_v40 = vmul.f32 %v2576_v46, %v2576_v46 }
  0xdd   : > { %v505_v10 = vrot.slane %v504_v34, 1  ;;  %v565_v61 = vadd.f32 %v564_v33, %v429_v4 }
  0xde   : > { %v2578_v2 = vpop.permute.xlu1 %859  ;;  %v2580_v25 = vpop.permute.xlu0 %854 }
  0xdf   : > { %v506_v6 = vadd.f32 %v505_v10, %v504_v34  ;;  %v566_v36 = vadd.f32 %v565_v61, %v431_v28 }
  0xe1   : > { %v576_v53 = vadd.f32 1e-10, %v506_v6  ;;  %v567_v13 = vadd.f32 %v566_v36, %v433_v42  ;;  %v1541_v36 = vld [vmem:[%s1821_s15 + $0x20] sm:$0xff] }
  0xe2   : > { %v2589_v3 = vpop.permute.xlu1 %869  ;;  %v2591_v15 = vpop.permute.xlu0 %864 }
  0xe3   : > { %1537 = vrsqrt.f32 %v576_v53  ;;  %v568_v4 = vadd.f32 %v567_v13, %v435_v40 }
  0xe5   : > { %v569_v10 = vadd.f32 %v568_v4, %v437_v9  ;;  %v1542_v9 = vld [vmem:[%s1821_s15] sm:$0xff] }
  0xe6   : > { %v2595_v33 = vpop.permute.xlu1 %879  ;;  %v2597_v34 = vpop.permute.xlu0 %874 }
  0xe7   : > { %v570_v61 = vrot.slane %v569_v10, 4 }
  0xe9   : > { %v571_v46 = vadd.f32 %v570_v61, %v569_v10 }
  0xea   : > { %v2599_v28 = vpop.permute.xlu1 %889  ;;  %v2601_v6 = vpop.permute.xlu0 %884 }
  0xeb   : > { %3365 = vst [vmem:[#allocation87_spill] sm:$0xff] %v2601_v6  ;;  %v572_v52 = vrot.slane %v571_v46, 2 }
  0xed   : > { %v2603_v57 = vpop.eup %1537  ;;  %v573_v40 = vadd.f32 %v572_v52, %v571_v46 }
  0xee   : > { %v2605_v42 = vpop.permute.xlu1 %899  ;;  %v2607_v13 = vpop.permute.xlu0 %894  ;;  %v584_v53 = vmul.f32 %v1541_v36, %v2603_v57  ;;  %v580_v4 = vmul.f32 %v1542_v9, %v2603_v57  ;;  %v586_v50 = vmul.f32 %v1543_v37, %v2603_v57  ;;  %v582_v10 = vmul.f32 %v1544_v16, %v2603_v57 }
  0xef   : > { %3366 = vst [vmem:[#allocation88_spill] sm:$0xff] %v2605_v42  ;;  %3367 = vst [vmem:[#allocation89_spill] sm:$0xff] %v2607_v13  ;;  %v590_v61 = vmul.f32 %v2603_v57, %v1884_v32  ;;  %v588_v13 = vmul.f32 %v1545_v27, %v2603_v57  ;;  %v594_v52 = vmul.f32 %v2603_v57, %v1897_v43  ;;  %v574_v46 = vrot.slane %v573_v40, 1 }
  0xf0   : > { %v1096_v36 = vmul.f32 %v2419_v30, %v584_v53  ;;  %v1092_v9 = vmul.f32 %v2426_v38, %v580_v4  ;;  %v1098_v37 = vmul.f32 %v2448_v22, %v586_v50  ;;  %v1094_v16 = vmul.f32 %v2450_v48, %v582_v10  ;;  %v1546_v50 = vld [vmem:[%s1821_s15 + $0x60] sm:$0xff] }
  0xf1   : > { %v1102_v59 = vmul.f32 %v2472_v20, %v590_v61  ;;  %v1100_v32 = vmul.f32 %v2474_v19, %v588_v13  ;;  %v1106_v42 = vmul.f32 %v2496_v0, %v594_v52  ;;  %v575_v43 = vadd.f32 %v574_v46, %v573_v40 }
  0xf2   : > { %v2630_v27 = vpop.permute.xlu1 %909  ;;  %v2632_v6 = vpop.permute.xlu0 %904  ;;  %1224 = vst [vmem:[%s2636_s20 + $0x20] sm:$0xff] %v1096_v36  ;;  %1220 = vst [vmem:[%s2636_s20] sm:$0xff] %v1092_v9  ;;  %v592_v13 = vmul.f32 %v1546_v50, %v2603_v57  ;;  %v598_v53 = vmul.f32 %v2603_v57, %v1912_v54  ;;  %v596_v40 = vmul.f32 %v2603_v57, %v1901_v49 }
  0xf3   : > { %1226 = vst [vmem:[%s2636_s20 + $0x30] sm:$0xff] %v1098_v37  ;;  %1222 = vst [vmem:[%s2636_s20 + $0x10] sm:$0xff] %v1094_v16  ;;  %v602_v4 = vmul.f32 %v2603_v57, %v1929_v1  ;;  %v600_v10 = vmul.f32 %v2603_v57, %v1918_v60  ;;  %v606_v61 = vmul.f32 %v2603_v57, %v1946_v12  ;;  %v577_v49 = vadd.f32 1e-10, %v575_v43 }
  0xf4   : > { %1230 = vst [vmem:[%s2636_s20 + $0x50] sm:$0xff] %v1102_v59  ;;  %1228 = vst [vmem:[%s2636_s20 + $0x40] sm:$0xff] %v1100_v32  ;;  %v604_v54 = vmul.f32 %v2603_v57, %v1935_v7  ;;  %v1104_v59 = vmul.f32 %v2498_v56, %v592_v13  ;;  %v1108_v1 = vmul.f32 %v2522_v63, %v596_v40 }
  0xf5   : > { %1234 = vst [vmem:[%s2636_s20 + $0x70] sm:$0xff] %v1106_v42  ;;  %v1110_v42 = vmul.f32 %v2520_v58, %v598_v53  ;;  %v1114_v52 = vmul.f32 %v2536_v45, %v602_v4  ;;  %v1112_v60 = vmul.f32 %v2538_v11, %v600_v10  ;;  %v1118_v12 = vmul.f32 %v2550_v17, %v606_v61 }
  0xf6   : > { %v1116_v46 = vmul.f32 %v2552_v44, %v604_v54  ;;  %v2666_v7 = vpop.permute.xlu1 %919  ;;  %v2668_v36 = vpop.permute.xlu0 %914  ;;  %1539 = vrsqrt.f32 %v577_v49  ;;  %1232 = vst [vmem:[%s2636_s20 + $0x60] sm:$0xff] %v1104_v59  ;;  %1236 = vst [vmem:[%s2636_s20 + $0x80] sm:$0xff] %v1108_v1  ;;  %v610_v9 = vmul.f32 %v2603_v57, %v1963_v23  ;;  %v608_v37 = vmul.f32 %v2603_v57, %v1952_v18 }
  0xf7   : > { %1238 = vst [vmem:[%s2636_s20 + $0x90] sm:$0xff] %v1110_v42  ;;  %v614_v16 = vmul.f32 %v2603_v57, %v1980_v35  ;;  %1242 = vst [vmem:[%s2636_s20 + $0xb0] sm:$0xff] %v1114_v52  ;;  %v612_v32 = vmul.f32 %v2603_v57, %v1969_v29  ;;  %v618_v43 = vmul.f32 %v2603_v57, %v1997_v47  ;;  %v3368_v42 = vld [vmem:[#allocation87_spill] sm:$0xff]  ;;  %v3369_v52 = vld [vmem:[#allocation88_spill] sm:$0xff] }
  0xf8   : > { %1240 = vst [vmem:[%s2636_s20 + $0xa0] sm:$0xff] %v1112_v60  ;;  %1246 = vst [vmem:[%s2636_s20 + $0xd0] sm:$0xff] %v1118_v12  ;;  %v616_v23 = vmul.f32 %v2603_v57, %v1986_v41  ;;  %v622_v18 = vmul.f32 %v2603_v57, %v2015_v62  ;;  %v1122_v35 = vmul.f32 %v2564_v26, %v610_v9 }
  0xf9   : > { %1244 = vst [vmem:[%s2636_s20 + $0xc0] sm:$0xff] %v1116_v46  ;;  %v1120_v50 = vmul.f32 %v2566_v24, %v608_v37  ;;  %v1126_v13 = vmul.f32 %v2578_v2, %v614_v16  ;;  %v620_v29 = vmul.f32 %v2603_v57, %v2003_v55  ;;  %v1124_v47 = vmul.f32 %v2580_v25, %v612_v32 }
  0xfa   : > { %v1130_v41 = vmul.f32 %v2589_v3, %v618_v43  ;;  %v1128_v53 = vmul.f32 %v2591_v15, %v616_v23  ;;  %v1134_v62 = vmul.f32 %v2595_v33, %v622_v18  ;;  %v2700_v40 = vpop.permute.xlu1 %929  ;;  %v2702_v4 = vpop.permute.xlu0 %924  ;;  %1250 = vst [vmem:[%s2636_s20 + $0xf0] sm:$0xff] %v1122_v35  ;;  %v626_v10 = vmul.f32 %v2603_v57, %v2033_v14  ;;  %v3372_v43 = vld [vmem:[#allocation13_spill] sm:$0xff]  ;;  %v3373_v18 = vld [vmem:[#allocation11_spill] sm:$0xff] }
  0xfb   : > { %1248 = vst [vmem:[%s2636_s20 + $0xe0] sm:$0xff] %v1120_v50  ;;  %1254 = vst [vmem:[%s2636_s20 + $0x110] sm:$0xff] %v1126_v13  ;;  %v1132_v55 = vmul.f32 %v2597_v34, %v620_v29  ;;  %v624_v61 = vmul.f32 %v2603_v57, %v2021_v5  ;;  %v630_v54 = vmul.f32 %v2603_v57, %v2051_v31  ;;  %v3374_v50 = vld [vmem:[#allocation17_spill] sm:$0xff]  ;;  %v3375_v29 = vld [vmem:[#allocation15_spill] sm:$0xff] }
  0xfc   : > { %1252 = vst [vmem:[%s2636_s20 + $0x100] sm:$0xff] %v1124_v47  ;;  %1258 = vst [vmem:[%s2636_s20 + $0x130] sm:$0xff] %v1130_v41  ;;  %v628_v49 = vmul.f32 %v2603_v57, %v2039_v21  ;;  %v634_v59 = vmul.f32 %v2603_v57, %v2069_v51  ;;  %v632_v14 = vmul.f32 %v2603_v57, %v2057_v39  ;;  %v3370_v21 = vld [vmem:[#allocation8_spill] sm:$0xff]  ;;  %v3371_v51 = vld [vmem:[#allocation89_spill] sm:$0xff] }
  0xfd   : > { %1256 = vst [vmem:[%s2636_s20 + $0x120] sm:$0xff] %v1128_v53  ;;  %1262 = vst [vmem:[%s2636_s20 + $0x150] sm:$0xff] %v1134_v62  ;;  %v638_v5 = vmul.f32 %v2603_v57, %v2089_v8  ;;  %v1138_v31 = vmul.f32 %v2599_v28, %v626_v10  ;;  %v1136_v1 = vmul.f32 %v3368_v42, %v624_v61  ;;  %v3376_v41 = vld [vmem:[#allocation21_spill] sm:$0xff]  ;;  %v3377_v62 = vld [vmem:[#allocation19_spill] sm:$0xff] }
  0xfe   : > { %1260 = vst [vmem:[%s2636_s20 + $0x140] sm:$0xff] %v1132_v55  ;;  %v1142_v60 = vmul.f32 %v3369_v52, %v630_v54  ;;  %v636_v12 = vmul.f32 %v2603_v57, %v3370_v21  ;;  %v1140_v46 = vmul.f32 %v3371_v51, %v628_v49  ;;  %v1146_v39 = vmul.f32 %v2630_v27, %v634_v59  ;;  %v2736_v37 = vpop.permute.xlu1 %939  ;;  %v2738_v16 = vpop.permute.xlu0 %934  ;;  %v3378_v10 = vld [vmem:[#allocation25_spill] sm:$0xff] }
  0xff   : > { %v1144_v8 = vmul.f32 %v2632_v6, %v632_v14  ;;  %v1150_v9 = vmul.f32 %v2666_v7, %v638_v5  ;;  %1266 = vst [vmem:[%s2636_s20 + $0x170] sm:$0xff] %v1138_v31  ;;  %1264 = vst [vmem:[%s2636_s20 + $0x160] sm:$0xff] %v1136_v1  ;;  %v642_v23 = vmul.f32 %v2603_v57, %v3372_v43  ;;  %v3379_v5 = vld [vmem:[#allocation23_spill] sm:$0xff]  ;;  %v1547_v1 = vld [vmem:[%s1821_s15 + $0x28] sm:$0xff] }
 0x100   : > { %1270 = vst [vmem:[%s2636_s20 + $0x190] sm:$0xff] %v1142_v60  ;;  %v1148_v32 = vmul.f32 %v2668_v36, %v636_v12  ;;  %v640_v35 = vmul.f32 %v2603_v57, %v3373_v18  ;;  %v646_v13 = vmul.f32 %v2603_v57, %v3374_v50  ;;  %1268 = vst [vmem:[%s2636_s20 + $0x180] sm:$0xff] %v1140_v46  ;;  %v2770_v54 = vpop.eup %1539  ;;  %v1548_v21 = vld [vmem:[%s1821_s15 + $0x8] sm:$0xff]  ;;  %v1549_v46 = vld [vmem:[%s1821_s15 + $0x38] sm:$0xff] }
 0x101   : > { %1274 = vst [vmem:[%s2636_s20 + $0x1b0] sm:$0xff] %v1146_v39  ;;  %1272 = vst [vmem:[%s2636_s20 + $0x1a0] sm:$0xff] %v1144_v8  ;;  %v2756_v47 = vmul.f32 %v2603_v57, %v3375_v29  ;;  %v2760_v53 = vmul.f32 %v2603_v57, %v3376_v41  ;;  %v2764_v55 = vmul.f32 %v2603_v57, %v3377_v62  ;;  %v1550_v8 = vld [vmem:[%s1821_s15 + $0x18] sm:$0xff]  ;;  %v1554_v41 = vld [vmem:[%s1821_s15 + $0x68] sm:$0xff] }
 0x102   : > { %1278 = vst [vmem:[%s2636_s20 + $0x1d0] sm:$0xff] %v1150_v9  ;;  %v2768_v61 = vmul.f32 %v2603_v57, %v3378_v10  ;;  %1276 = vst [vmem:[%s2636_s20 + $0x1c0] sm:$0xff] %v1148_v32  ;;  %v1154_v49 = vmul.f32 %v2700_v40, %v642_v23  ;;  %v1152_v59 = vmul.f32 %v2702_v4, %v640_v35  ;;  %v2788_v32 = vpop.permute.xlu1 %949  ;;  %v2790_v43 = vpop.permute.xlu0 %944  ;;  %v1551_v23 = vld [vmem:[%s1821_s15 + $0x58] sm:$0xff]  ;;  %v1552_v35 = vld [vmem:[%s1821_s15 + $0x48] sm:$0xff] }
 0x103   : > { %v1158_v14 = vmul.f32 %v2736_v37, %v646_v13  ;;  %v2778_v31 = vmul.f32 %v2603_v57, %v3379_v5  ;;  %v585_v60 = vmul.f32 %v1547_v1, %v2770_v54  ;;  %v581_v12 = vmul.f32 %v1548_v21, %v2770_v54  ;;  %v1553_v13 = vld [vmem:[%s1821_s15 + $0x78] sm:$0xff] }
 0x104   : > { %v587_v39 = vmul.f32 %v1549_v46, %v2770_v54  ;;  %v583_v9 = vmul.f32 %v1550_v8, %v2770_v54  ;;  %v591_v18 = vmul.f32 %v1551_v23, %v2770_v54  ;;  %v589_v50 = vmul.f32 %v1552_v35, %v2770_v54  ;;  %1282 = vst [vmem:[%s2636_s20 + $0x1f0] sm:$0xff] %v1154_v49 }
 0x105   : > { %v595_v29 = vmul.f32 %v1553_v13, %v2770_v54  ;;  %v593_v62 = vmul.f32 %v1554_v41, %v2770_v54  ;;  %1280 = vst [vmem:[%s2636_s20 + $0x1e0] sm:$0xff] %v1152_v59  ;;  %1286 = vst [vmem:[%s2636_s20 + $0x210] sm:$0xff] %v1158_v14  ;;  %v1097_v10 = vmul.f32 %v2419_v30, %v585_v60  ;;  %v1556_v30 = vld [vmem:[%s1821_s15 + $0x88] sm:$0xff]  ;;  %v1559_v60 = vld [vmem:[%s1821_s15 + $0xd8] sm:$0xff] }
 0x106   : > { %v1093_v5 = vmul.f32 %v2426_v38, %v581_v12  ;;  %v1099_v1 = vmul.f32 %v2448_v22, %v587_v39  ;;  %v1095_v21 = vmul.f32 %v2450_v48, %v583_v9  ;;  %v1103_v46 = vmul.f32 %v2472_v20, %v591_v18  ;;  %v1555_v38 = vld [vmem:[%s1821_s15 + $0x98] sm:$0xff]  ;;  %v1558_v20 = vld [vmem:[%s1821_s15 + $0xa8] sm:$0xff]  ;;  %v2823_v59 = vpop.permute.xlu1 %959  ;;  %v2825_v14 = vpop.permute.xlu0 %954 }
 0x107   : > { %v1101_v8 = vmul.f32 %v2474_v19, %v589_v50  ;;  %v1107_v23 = vmul.f32 %v2496_v0, %v595_v29  ;;  %v1105_v49 = vmul.f32 %v2498_v56, %v593_v62  ;;  %1225 = vst [vmem:[%s2636_s20 + $0x28] sm:$0xff] %v1097_v10  ;;  %v599_v48 = vmul.f32 %v1555_v38, %v2770_v54  ;;  %v1557_v22 = vld [vmem:[%s1821_s15 + $0xb8] sm:$0xff]  ;;  %v1560_v39 = vld [vmem:[%s1821_s15 + $0xc8] sm:$0xff] }
 0x108   : > { %1221 = vst [vmem:[%s2636_s20 + $0x8] sm:$0xff] %v1093_v5  ;;  %1227 = vst [vmem:[%s2636_s20 + $0x38] sm:$0xff] %v1099_v1  ;;  %v597_v19 = vmul.f32 %v1556_v30, %v2770_v54  ;;  %v603_v56 = vmul.f32 %v1557_v22, %v2770_v54  ;;  %v601_v0 = vmul.f32 %v1558_v20, %v2770_v54  ;;  %v1561_v18 = vld [vmem:[%s1821_s15 + $0xf8] sm:$0xff]  ;;  %v1562_v50 = vld [vmem:[%s1821_s15 + $0xe8] sm:$0xff] }
 0x109   : > { %1223 = vst [vmem:[%s2636_s20 + $0x18] sm:$0xff] %v1095_v21  ;;  %1231 = vst [vmem:[%s2636_s20 + $0x58] sm:$0xff] %v1103_v46  ;;  %v607_v12 = vmul.f32 %v1559_v60, %v2770_v54  ;;  %v605_v9 = vmul.f32 %v1560_v39, %v2770_v54  ;;  %v611_v35 = vmul.f32 %v1561_v18, %v2770_v54 }
 0x10a   : > { %1229 = vst [vmem:[%s2636_s20 + $0x48] sm:$0xff] %v1101_v8  ;;  %1235 = vst [vmem:[%s2636_s20 + $0x78] sm:$0xff] %v1107_v23  ;;  %v609_v13 = vmul.f32 %v1562_v50, %v2770_v54  ;;  %v1111_v29 = vmul.f32 %v2520_v58, %v599_v48  ;;  %v1109_v41 = vmul.f32 %v2522_v63, %v597_v19  ;;  %v1563_v58 = vld [vmem:[%s1821_s15 + $0x118] sm:$0xff]  ;;  %v1565_v8 = vld [vmem:[%s1821_s15 + $0x128] sm:$0xff]  ;;  %v2859_v23 = vpop.permute.xlu1 %969 }
 0x10b   : > { %1233 = vst [vmem:[%s2636_s20 + $0x68] sm:$0xff] %v1105_v49  ;;  %v1115_v62 = vmul.f32 %v2536_v45, %v603_v56  ;;  %v1113_v10 = vmul.f32 %v2538_v11, %v601_v0  ;;  %v1119_v5 = vmul.f32 %v2550_v17, %v607_v12  ;;  %v1117_v1 = vmul.f32 %v2552_v44, %v605_v9  ;;  %v1564_v11 = vld [vmem:[%s1821_s15 + $0x108] sm:$0xff]  ;;  %v3381_v49 = vld [vmem:[#allocation12_spill] sm:$0xff]  ;;  %v3382_v48 = vld [vmem:[#allocation10_spill] sm:$0xff] }
 0x10c   : > { %v1123_v21 = vmul.f32 %v2564_v26, %v611_v35  ;;  %v1121_v46 = vmul.f32 %v2566_v24, %v609_v13  ;;  %1239 = vst [vmem:[%s2636_s20 + $0x98] sm:$0xff] %v1111_v29  ;;  %1237 = vst [vmem:[%s2636_s20 + $0x88] sm:$0xff] %v1109_v41  ;;  %v615_v45 = vmul.f32 %v1563_v58, %v2770_v54  ;;  %v3380_v17 = vld [vmem:[#allocation9_spill] sm:$0xff]  ;;  %v2861_v24 = vpop.permute.xlu0 %964  ;;  %v3383_v19 = vld [vmem:[#allocation16_spill] sm:$0xff] }
 0x10d   : > { %1243 = vst [vmem:[%s2636_s20 + $0xb8] sm:$0xff] %v1115_v62  ;;  %1241 = vst [vmem:[%s2636_s20 + $0xa8] sm:$0xff] %v1113_v10  ;;  %v613_v63 = vmul.f32 %v1564_v11, %v2770_v54  ;;  %v619_v44 = vmul.f32 %v2770_v54, %v3380_v17  ;;  %v617_v26 = vmul.f32 %v1565_v8, %v2770_v54  ;;  %v3384_v56 = vld [vmem:[#allocation14_spill] sm:$0xff]  ;;  %v3387_v13 = vld [vmem:[#allocation24_spill] sm:$0xff] }
 0x10e   : > { %1247 = vst [vmem:[%s2636_s20 + $0xd8] sm:$0xff] %v1119_v5  ;;  %1245 = vst [vmem:[%s2636_s20 + $0xc8] sm:$0xff] %v1117_v1  ;;  %v623_v38 = vmul.f32 %v2770_v54, %v3381_v49  ;;  %v621_v30 = vmul.f32 %v2770_v54, %v3382_v48  ;;  %v627_v22 = vmul.f32 %v2770_v54, %v3383_v19  ;;  %v3388_v29 = vld [vmem:[#allocation22_spill] sm:$0xff]  ;;  %v2895_v41 = vpop.permute.xlu1 %979  ;;  %v3391_v1 = vld [vmem:[#allocation31_spill] sm:$0xff] }
 0x10f   : > { %1251 = vst [vmem:[%s2636_s20 + $0xf8] sm:$0xff] %v1123_v21  ;;  %1249 = vst [vmem:[%s2636_s20 + $0xe8] sm:$0xff] %v1121_v46  ;;  %v625_v20 = vmul.f32 %v2770_v54, %v3384_v56  ;;  %v1127_v0 = vmul.f32 %v2578_v2, %v615_v45  ;;  %v1125_v60 = vmul.f32 %v2580_v25, %v613_v63  ;;  %v3385_v25 = vld [vmem:[#allocation20_spill] sm:$0xff]  ;;  %v3390_v10 = vld [vmem:[#allocation26_spill] sm:$0xff] }
 0x110   : > { %v1131_v12 = vmul.f32 %v2589_v3, %v619_v44  ;;  %v1129_v39 = vmul.f32 %v2591_v15, %v617_v26  ;;  %v1135_v9 = vmul.f32 %v2595_v33, %v623_v38  ;;  %v1133_v18 = vmul.f32 %v2597_v34, %v621_v30  ;;  %v3386_v3 = vld [vmem:[#allocation18_spill] sm:$0xff]  ;;  %v3392_v46 = vld [vmem:[#allocation29_spill] sm:$0xff] }
 0x111   : > { %v1139_v35 = vmul.f32 %v2599_v28, %v627_v22  ;;  %v1137_v50 = vmul.f32 %v3368_v42, %v625_v20  ;;  %1255 = vst [vmem:[%s2636_s20 + $0x118] sm:$0xff] %v1127_v0  ;;  %1253 = vst [vmem:[%s2636_s20 + $0x108] sm:$0xff] %v1125_v60  ;;  %v631_v2 = vmul.f32 %v2770_v54, %v3385_v25  ;;  %v2897_v28 = vpop.permute.xlu0 %974  ;;  %v3389_v42 = vld [vmem:[#allocation27_spill] sm:$0xff]  ;;  %v3396_v30 = vld [vmem:[#allocation37_spill] sm:$0xff] }
 0x112   : > { %1259 = vst [vmem:[%s2636_s20 + $0x138] sm:$0xff] %v1131_v12  ;;  %1257 = vst [vmem:[%s2636_s20 + $0x128] sm:$0xff] %v1129_v39  ;;  %v629_v15 = vmul.f32 %v2770_v54, %v3386_v3  ;;  %v635_v33 = vmul.f32 %v2770_v54, %v3387_v13  ;;  %v633_v34 = vmul.f32 %v2770_v54, %v3388_v29  ;;  %v3397_v22 = vld [vmem:[#allocation43_spill] sm:$0xff]  ;;  %v3398_v39 = vld [vmem:[#allocation41_spill] sm:$0xff] }
 0x113   : > { %1263 = vst [vmem:[%s2636_s20 + $0x158] sm:$0xff] %v1135_v9  ;;  %1261 = vst [vmem:[%s2636_s20 + $0x148] sm:$0xff] %v1133_v18  ;;  %v639_v62 = vmul.f32 %v2770_v54, %v3389_v42  ;;  %v637_v5 = vmul.f32 %v2770_v54, %v3390_v10  ;;  %v643_v21 = vmul.f32 %v2770_v54, %v3391_v1  ;;  %v1566_v18 = vld [vmem:[%s1821_s15 + $0x260] sm:$0xff]  ;;  %v3403_v13 = vld [vmem:[#allocation51_spill] sm:$0xff]  ;;  %s1364_s15 = sshll.u32 %s2636_s20, 4  ;;  %s3141_s15 = int_to_ptr.vmem [resolvable:$true] %s1364_s15 }
 0x114   : > { %1267 = vst [vmem:[%s2636_s20 + $0x178] sm:$0xff] %v1139_v35  ;;  %1265 = vst [vmem:[%s2636_s20 + $0x168] sm:$0xff] %v1137_v50  ;;  %v641_v58 = vmul.f32 %v2770_v54, %v3392_v46  ;;  %v1143_v45 = vmul.f32 %v3369_v52, %v631_v2  ;;  %v1141_v11 = vmul.f32 %v3371_v51, %v629_v15  ;;  %v3393_v52 = vld [vmem:[#allocation35_spill] sm:$0xff]  ;;  %v3394_v51 = vld [vmem:[#allocation33_spill] sm:$0xff]  ;;  %s1597_s28 = scalar_lea.vmem %s3141_s15, 16384  ;;  %p1604_p6 = scmp.lt.s32.totalorder %s3141_s15, %s1602_s8 }
 0x115   : > { %v1147_v63 = vmul.f32 %v2630_v27, %v635_v33  ;;  %v1145_v17 = vmul.f32 %v2632_v6, %v633_v34  ;;  %v1151_v44 = vmul.f32 %v2666_v7, %v639_v62  ;;  %v1149_v8 = vmul.f32 %v2668_v36, %v637_v5  ;;  %v3395_v36 = vld [vmem:[#allocation39_spill] sm:$0xff]  ;;  %v3401_v35 = vld [vmem:[#allocation45_spill] sm:$0xff]  ;;  %v3402_v3 = vld [vmem:[#allocation32_spill] sm:$0xff]  ;;  %p1598_p8 = scmp.ne.s32.totalorder %s3141_s15, %s1597_s28  ;;  %p1605_p13 = scmp.lt.s32.totalorder %s1603_s30, %s1597_s28 }
 0x116   : > { %v1155_v26 = vmul.f32 %v2700_v40, %v643_v21  ;;  %v1153_v49 = vmul.f32 %v2702_v4, %v641_v58  ;;  %1271 = vst [vmem:[%s2636_s20 + $0x198] sm:$0xff] %v1143_v45  ;;  %1269 = vst [vmem:[%s2636_s20 + $0x188] sm:$0xff] %v1141_v11  ;;  %v647_v27 = vmul.f32 %v2770_v54, %v3393_v52  ;;  %v2931_v40 = vpop.permute.xlu1 %989  ;;  %v2933_v4 = vpop.permute.xlu0 %984  ;;  %v3404_v29 = vld [vmem:[#allocation30_spill] sm:$0xff]  ;;  %v3405_v21 = vld [vmem:[#allocation49_spill] sm:$0xff] }
 0x117   : > { %1275 = vst [vmem:[%s2636_s20 + $0x1b8] sm:$0xff] %v1147_v63  ;;  %1273 = vst [vmem:[%s2636_s20 + $0x1a8] sm:$0xff] %v1145_v17  ;;  %v645_v6 = vmul.f32 %v2770_v54, %v3394_v51  ;;  %v1156_v7 = vmul.f32 %v2738_v16, %v2756_v47  ;;  %v651_v38 = vmul.f32 %v2770_v54, %v3395_v36  ;;  %v3407_v45 = vld [vmem:[#allocation55_spill] sm:$0xff]  ;;  %v3408_v63 = vld [vmem:[#allocation34_spill] sm:$0xff]  ;;  %p1599_p11 = pnand %p1598_p8, %p3450_p9  ;;  %p1606_p2 = por %p1605_p13, %p1604_p6 }
 0x118   : > { %1279 = vst [vmem:[%s2636_s20 + $0x1d8] sm:$0xff] %v1151_v44  ;;  %1277 = vst [vmem:[%s2636_s20 + $0x1c8] sm:$0xff] %v1149_v8  ;;  %v1162_v48 = vmul.f32 %v2788_v32, %v2760_v53  ;;  %v649_v47 = vmul.f32 %v2770_v54, %v3396_v30  ;;  %v1160_v19 = vmul.f32 %v2790_v43, %v2764_v55  ;;  %v3409_v17 = vld [vmem:[#allocation53_spill] sm:$0xff]  ;;  %v3410_v52 = vld [vmem:[#allocation40_spill] sm:$0xff] }
 0x119   : > { %1283 = vst [vmem:[%s2636_s20 + $0x1f8] sm:$0xff] %v1155_v26  ;;  %1281 = vst [vmem:[%s2636_s20 + $0x1e8] sm:$0xff] %v1153_v49  ;;  %v655_v56 = vmul.f32 %v2770_v54, %v3397_v22  ;;  %v1159_v20 = vmul.f32 %v2736_v37, %v647_v27  ;;  %v1157_v0 = vmul.f32 %v2738_v16, %v645_v6  ;;  %v3411_v51 = vld [vmem:[#allocation59_spill] sm:$0xff]  ;;  %v3413_v22 = vld [vmem:[#allocation57_spill] sm:$0xff]  ;;  %p1600_p0 = pneg %p1599_p11 }
 0x11a   : > { %1284 = vst [vmem:[%s2636_s20 + $0x200] sm:$0xff] %v1156_v7  ;;  %v1163_v53 = vmul.f32 %v2788_v32, %v651_v38  ;;  %v1166_v60 = vmul.f32 %v2823_v59, %v2768_v61  ;;  %1290 = vst [vmem:[%s2636_s20 + $0x230] sm:$0xff] %v1162_v48  ;;  %v1161_v12 = vmul.f32 %v2790_v43, %v649_v47  ;;  %v3399_v61 = vld [vmem:[#allocation28_spill] sm:$0xff]  ;;  %v3400_v43 = vld [vmem:[#allocation47_spill] sm:$0xff]  ;;  %v1000_v25 = vpop.permute.xlu1 %999  ;;  %v995_v2 = vpop.permute.xlu0 %994 }
 0x11b   : > { %1288 = vst [vmem:[%s2636_s20 + $0x220] sm:$0xff] %v1160_v19  ;;  %v1167_v55 = vmul.f32 %v2823_v59, %v655_v56  ;;  %v653_v37 = vmul.f32 %v2770_v54, %v3398_v39  ;;  %v1164_v16 = vmul.f32 %v2825_v14, %v2778_v31  ;;  %1287 = vst [vmem:[%s2636_s20 + $0x218] sm:$0xff] %v1159_v20  ;;  %v3412_v7 = vld [vmem:[#allocation38_spill] sm:$0xff]  ;;  %p1607_p5 = pnand %p1606_p2, %p1600_p0 }
 0x11c   : > { %1285 = vst [vmem:[%s2636_s20 + $0x208] sm:$0xff] %v1157_v0  ;;  %1291 = vst [vmem:[%s2636_s20 + $0x238] sm:$0xff] %v1163_v53  ;;  %v658_v32 = vmul.f32 %v2603_v57, %v3399_v61  ;;  %v659_v9 = vmul.f32 %v2770_v54, %v3400_v43  ;;  %v656_v59 = vmul.f32 %v1566_v18, %v2603_v57  ;;  %v3414_v0 = vld [vmem:[#allocation44_spill] sm:$0xff]  ;;  %v3415_v53 = vld [vmem:[#allocation63_spill] sm:$0xff] }
 0x11d   : > { %1294 = vst [vmem:[%s2636_s20 + $0x250] sm:$0xff] %v1166_v60  ;;  %v657_v50 = vmul.f32 %v2770_v54, %v3401_v35  ;;  %1289 = vst [vmem:[%s2636_s20 + $0x228] sm:$0xff] %v1161_v12  ;;  %v1165_v31 = vmul.f32 %v2825_v14, %v653_v37  ;;  %v662_v15 = vmul.f32 %v2603_v57, %v3402_v3  ;;  %v3416_v60 = vld [vmem:[#allocation42_spill] sm:$0xff] }
 0x11e   : > { %1295 = vst [vmem:[%s2636_s20 + $0x258] sm:$0xff] %v1167_v55  ;;  %1292 = vst [vmem:[%s2636_s20 + $0x240] sm:$0xff] %v1164_v16  ;;  %v663_v33 = vmul.f32 %v2770_v54, %v3403_v13  ;;  %v660_v34 = vmul.f32 %v2603_v57, %v3404_v29  ;;  %v1170_v42 = vmul.f32 %v2859_v23, %v658_v32  ;;  %v1010_v8 = vpop.permute.xlu1 %1009  ;;  %v1005_v26 = vpop.permute.xlu0 %1004  ;;  %v3417_v55 = vld [vmem:[#allocation61_spill] sm:$0xff]  ;;  %v3418_v32 = vld [vmem:[#allocation48_spill] sm:$0xff] }
 0x11f   : > { %v1171_v62 = vmul.f32 %v2859_v23, %v659_v9  ;;  %v1168_v10 = vmul.f32 %v2861_v24, %v656_v59  ;;  %v1169_v14 = vmul.f32 %v2861_v24, %v657_v50  ;;  %1293 = vst [vmem:[%s2636_s20 + $0x248] sm:$0xff] %v1165_v31  ;;  %v1174_v5 = vmul.f32 %v2895_v41, %v662_v15  ;;  %v3406_v23 = vld [vmem:[#allocation36_spill] sm:$0xff]  ;;  %v3419_v9 = vld [vmem:[#allocation67_spill] sm:$0xff]  ;;  %v3420_v59 = vld [vmem:[#allocation46_spill] sm:$0xff] }
 0x120   : > { %v1175_v1 = vmul.f32 %v2895_v41, %v663_v33  ;;  %v661_v46 = vmul.f32 %v2770_v54, %v3405_v21  ;;  %v1172_v58 = vmul.f32 %v2897_v28, %v660_v34  ;;  %1298 = vst [vmem:[%s2636_s20 + $0x270] sm:$0xff] %v1170_v42  ;;  %v666_v24 = vmul.f32 %v2603_v57, %v3406_v23  ;;  %v3421_v13 = vld [vmem:[#allocation65_spill] sm:$0xff]  ;;  %v3422_v42 = vld [vmem:[#allocation52_spill] sm:$0xff] }
 0x121   : > { %1299 = vst [vmem:[%s2636_s20 + $0x278] sm:$0xff] %v1171_v62  ;;  %1296 = vst [vmem:[%s2636_s20 + $0x260] sm:$0xff] %v1168_v10  ;;  %v667_v11 = vmul.f32 %v2770_v54, %v3407_v45  ;;  %v664_v41 = vmul.f32 %v2603_v57, %v3408_v63  ;;  %v665_v44 = vmul.f32 %v2770_v54, %v3409_v17  ;;  %v3423_v10 = vld [vmem:[#allocation71_spill] sm:$0xff] }
 0x122   : > { %1297 = vst [vmem:[%s2636_s20 + $0x268] sm:$0xff] %v1169_v14  ;;  %1302 = vst [vmem:[%s2636_s20 + $0x290] sm:$0xff] %v1174_v5  ;;  %v1173_v49 = vmul.f32 %v2897_v28, %v661_v46  ;;  %v670_v27 = vmul.f32 %v2603_v57, %v3410_v52  ;;  %v671_v6 = vmul.f32 %v2770_v54, %v3411_v51  ;;  %v1020_v37 = vpop.permute.xlu1 %1019  ;;  %v1015_v16 = vpop.permute.xlu0 %1014  ;;  %v3425_v46 = vld [vmem:[#allocation69_spill] sm:$0xff] }
 0x123   : > { %1303 = vst [vmem:[%s2636_s20 + $0x298] sm:$0xff] %v1175_v1  ;;  %1300 = vst [vmem:[%s2636_s20 + $0x280] sm:$0xff] %v1172_v58  ;;  %v668_v36 = vmul.f32 %v2603_v57, %v3412_v7  ;;  %v1178_v38 = vmul.f32 %v2931_v40, %v666_v24  ;;  %v1179_v48 = vmul.f32 %v2931_v40, %v667_v11  ;;  %v3424_v1 = vld [vmem:[#allocation50_spill] sm:$0xff]  ;;  %v3426_v24 = vld [vmem:[#allocation56_spill] sm:$0xff] }
 0x124   : > { %v1176_v30 = vmul.f32 %v2933_v4, %v664_v41  ;;  %v1177_v28 = vmul.f32 %v2933_v4, %v665_v44  ;;  %1301 = vst [vmem:[%s2636_s20 + $0x288] sm:$0xff] %v1173_v49  ;;  %v1182_v47 = vmul.f32 %v1000_v25, %v670_v27  ;;  %v1183_v19 = vmul.f32 %v1000_v25, %v671_v6  ;;  %v3427_v11 = vld [vmem:[#allocation75_spill] sm:$0xff]  ;;  %v3428_v41 = vld [vmem:[#allocation54_spill] sm:$0xff]  ;;  %v3429_v52 = vld [vmem:[#allocation73_spill] sm:$0xff] }
 0x125   : > { %v669_v56 = vmul.f32 %v2770_v54, %v3413_v22  ;;  %v1180_v20 = vmul.f32 %v995_v2, %v668_v36  ;;  %1306 = vst [vmem:[%s2636_s20 + $0x2b0] sm:$0xff] %v1178_v38  ;;  %1307 = vst [vmem:[%s2636_s20 + $0x2b8] sm:$0xff] %v1179_v48  ;;  %v674_v40 = vmul.f32 %v2603_v57, %v3414_v0  ;;  %v3430_v7 = vld [vmem:[#allocation60_spill] sm:$0xff]  ;;  %v3431_v38 = vld [vmem:[#allocation78_spill] sm:$0xff] }
 0x126   : > { %1304 = vst [vmem:[%s2636_s20 + $0x2a0] sm:$0xff] %v1176_v30  ;;  %1305 = vst [vmem:[%s2636_s20 + $0x2a8] sm:$0xff] %v1177_v28  ;;  %v675_v4 = vmul.f32 %v2770_v54, %v3415_v53  ;;  %v672_v12 = vmul.f32 %v2603_v57, %v3416_v60  ;;  %v673_v39 = vmul.f32 %v2770_v54, %v3417_v55  ;;  %v1030_v34 = vpop.permute.xlu1 %1029  ;;  %v1025_v5 = vpop.permute.xlu0 %1024  ;;  %v3432_v30 = vld [vmem:[#allocation58_spill] sm:$0xff] }
 0x127   : > { %1310 = vst [vmem:[%s2636_s20 + $0x2d0] sm:$0xff] %v1182_v47  ;;  %1311 = vst [vmem:[%s2636_s20 + $0x2d8] sm:$0xff] %v1183_v19  ;;  %v1181_v61 = vmul.f32 %v995_v2, %v669_v56  ;;  %v678_v43 = vmul.f32 %v2603_v57, %v3418_v32  ;;  %v679_v18 = vmul.f32 %v2770_v54, %v3419_v9  ;;  %v3433_v47 = vld [vmem:[#allocation77_spill] sm:$0xff] }
 0x128   : > { %1308 = vst [vmem:[%s2636_s20 + $0x2c0] sm:$0xff] %v1180_v20  ;;  %v676_v35 = vmul.f32 %v2603_v57, %v3420_v59  ;;  %v1186_v50 = vmul.f32 %v1010_v8, %v674_v40  ;;  %v1187_v25 = vmul.f32 %v1010_v8, %v675_v4  ;;  %v1184_v31 = vmul.f32 %v1005_v26, %v672_v12  ;;  %v3434_v4 = vld [vmem:[#allocation64_spill] sm:$0xff] }
 0x129   : > { %v1185_v3 = vmul.f32 %v1005_v26, %v673_v39  ;;  %1309 = vst [vmem:[%s2636_s20 + $0x2c8] sm:$0xff] %v1181_v61  ;;  %v1190_v2 = vmul.f32 %v1020_v37, %v678_v43  ;;  %v1191_v15 = vmul.f32 %v1020_v37, %v679_v18  ;;  %v677_v33 = vmul.f32 %v2770_v54, %v3421_v13  ;;  %v3435_v12 = vld [vmem:[#allocation80_spill] sm:$0xff]  ;;  %v3436_v39 = vld [vmem:[#allocation62_spill] sm:$0xff]  ;;  %v3441_v13 = vld [vmem:[#allocation81_spill] sm:$0xff] }
 0x12a   : > { %v1188_v29 = vmul.f32 %v1015_v16, %v676_v35  ;;  %1314 = vst [vmem:[%s2636_s20 + $0x2f0] sm:$0xff] %v1186_v50  ;;  %1315 = vst [vmem:[%s2636_s20 + $0x2f8] sm:$0xff] %v1187_v25  ;;  %v682_v62 = vmul.f32 %v2603_v57, %v3422_v42  ;;  %v683_v14 = vmul.f32 %v2770_v54, %v3423_v10  ;;  %v1040_v51 = vpop.permute.xlu1 %1039  ;;  %v1035_v6 = vpop.permute.xlu0 %1034  ;;  %v3438_v50 = vld [vmem:[#allocation68_spill] sm:$0xff] }
 0x12b   : > { %1312 = vst [vmem:[%s2636_s20 + $0x2e0] sm:$0xff] %v1184_v31  ;;  %1313 = vst [vmem:[%s2636_s20 + $0x2e8] sm:$0xff] %v1185_v3  ;;  %v680_v21 = vmul.f32 %v2603_v57, %v3424_v1  ;;  %v681_v58 = vmul.f32 %v2770_v54, %v3425_v46  ;;  %v1189_v23 = vmul.f32 %v1015_v16, %v677_v33  ;;  %v3437_v16 = vld [vmem:[#allocation79_spill] sm:$0xff]  ;;  %v3439_v31 = vld [vmem:[#allocation82_spill] sm:$0xff] }
 0x12c   : > { %1318 = vst [vmem:[%s2636_s20 + $0x310] sm:$0xff] %v1190_v2  ;;  %1319 = vst [vmem:[%s2636_s20 + $0x318] sm:$0xff] %v1191_v15  ;;  %v686_v45 = vmul.f32 %v2603_v57, %v3426_v24  ;;  %v687_v63 = vmul.f32 %v2770_v54, %v3427_v11  ;;  %v684_v17 = vmul.f32 %v2603_v57, %v3428_v41  ;;  %v3440_v2 = vld [vmem:[#allocation66_spill] sm:$0xff]  ;;  %v3445_v24 = vld [vmem:[#allocation83_spill] sm:$0xff] }
 0x12d   : > { %1316 = vst [vmem:[%s2636_s20 + $0x300] sm:$0xff] %v1188_v29  ;;  %v1194_v44 = vmul.f32 %v1030_v34, %v682_v62  ;;  %v1195_v8 = vmul.f32 %v1030_v34, %v683_v14  ;;  %v1192_v26 = vmul.f32 %v1025_v5, %v680_v21  ;;  %v1193_v49 = vmul.f32 %v1025_v5, %v681_v58  ;;  %v3442_v5 = vld [vmem:[#allocation72_spill] sm:$0xff]  ;;  %v3444_v58 = vld [vmem:[#allocation70_spill] sm:$0xff] }
 0x12e   : > { %1317 = vst [vmem:[%s2636_s20 + $0x308] sm:$0xff] %v1189_v23  ;;  %v685_v27 = vmul.f32 %v2770_v54, %v3429_v52  ;;  %v690_v36 = vmul.f32 %v2603_v57, %v3430_v7  ;;  %v691_v48 = vmul.f32 %v2770_v54, %v3431_v38  ;;  %v688_v28 = vmul.f32 %v2603_v57, %v3432_v30  ;;  %v1050_v40 = vpop.permute.xlu1 %1049  ;;  %v1045_v53 = vpop.permute.xlu0 %1044  ;;  %v3443_v21 = vld [vmem:[#allocation84_spill] sm:$0xff]  ;;  %v3447_v52 = vld [vmem:[#allocation86_spill] sm:$0xff]  ;;  %v3449_v7 = vld [vmem:[#allocation85_spill] sm:$0xff] }
 0x12f   : > { %1322 = vst [vmem:[%s2636_s20 + $0x330] sm:$0xff] %v1194_v44  ;;  %1323 = vst [vmem:[%s2636_s20 + $0x338] sm:$0xff] %v1195_v8  ;;  %v689_v19 = vmul.f32 %v2770_v54, %v3433_v47  ;;  %v1198_v22 = vmul.f32 %v1040_v51, %v686_v45  ;;  %v1199_v56 = vmul.f32 %v1040_v51, %v687_v63  ;;  %v3448_v51 = vld [vmem:[#allocation74_spill] sm:$0xff] }
 0x130   : > { %1320 = vst [vmem:[%s2636_s20 + $0x320] sm:$0xff] %v1192_v26  ;;  %1321 = vst [vmem:[%s2636_s20 + $0x328] sm:$0xff] %v1193_v49  ;;  %v1196_v20 = vmul.f32 %v1035_v6, %v684_v17  ;;  %v1197_v0 = vmul.f32 %v1035_v6, %v685_v27  ;;  %v694_v60 = vmul.f32 %v2603_v57, %v3434_v4  ;;  %v3446_v26 = vld [vmem:[#allocation76_spill] sm:$0xff] }
 0x131   : > { %1326 = vst [vmem:[%s2636_s20 + $0x350] sm:$0xff] %v1198_v22  ;;  %1327 = vst [vmem:[%s2636_s20 + $0x358] sm:$0xff] %v1199_v56  ;;  %v695_v55 = vmul.f32 %v2770_v54, %v3435_v12  ;;  %v692_v37 = vmul.f32 %v2603_v57, %v3436_v39  ;;  %v693_v61 = vmul.f32 %v2770_v54, %v3437_v16 }
 0x132   : > { %1324 = vst [vmem:[%s2636_s20 + $0x340] sm:$0xff] %v1196_v20  ;;  %1325 = vst [vmem:[%s2636_s20 + $0x348] sm:$0xff] %v1197_v0  ;;  %v1202_v32 = vmul.f32 %v1050_v40, %v690_v36  ;;  %v1203_v43 = vmul.f32 %v1050_v40, %v691_v48  ;;  %v1200_v9 = vmul.f32 %v1045_v53, %v688_v28  ;;  %v1060_v59 = vpop.permute.xlu1 %1059  ;;  %v1055_v35 = vpop.permute.xlu0 %1054 }
 0x133   : > { %v1201_v18 = vmul.f32 %v1045_v53, %v689_v19  ;;  %v698_v25 = vmul.f32 %v2603_v57, %v3438_v50  ;;  %v699_v3 = vmul.f32 %v2770_v54, %v3439_v31  ;;  %v696_v15 = vmul.f32 %v2603_v57, %v3440_v2 }
 0x134   : > { %1330 = vst [vmem:[%s2636_s20 + $0x370] sm:$0xff] %v1202_v32  ;;  %1331 = vst [vmem:[%s2636_s20 + $0x378] sm:$0xff] %v1203_v43  ;;  %v697_v33 = vmul.f32 %v2770_v54, %v3441_v13  ;;  %v1206_v29 = vmul.f32 %v1060_v59, %v694_v60  ;;  %v1207_v34 = vmul.f32 %v1060_v59, %v695_v55 }
 0x135   : > { %1328 = vst [vmem:[%s2636_s20 + $0x360] sm:$0xff] %v1200_v9  ;;  %1329 = vst [vmem:[%s2636_s20 + $0x368] sm:$0xff] %v1201_v18  ;;  %v1204_v42 = vmul.f32 %v1055_v35, %v692_v37  ;;  %v1205_v62 = vmul.f32 %v1055_v35, %v693_v61  ;;  %v702_v1 = vmul.f32 %v2603_v57, %v3442_v5 }
 0x136   : > { %1334 = vst [vmem:[%s2636_s20 + $0x390] sm:$0xff] %v1206_v29  ;;  %1335 = vst [vmem:[%s2636_s20 + $0x398] sm:$0xff] %v1207_v34  ;;  %v1070_v10 = vpop.permute.xlu1 %1069  ;;  %v1065_v14 = vpop.permute.xlu0 %1064  ;;  %v703_v46 = vmul.f32 %v2770_v54, %v3443_v21  ;;  %v700_v23 = vmul.f32 %v2603_v57, %v3444_v58  ;;  %v701_v45 = vmul.f32 %v2770_v54, %v3445_v24 }
 0x137   : > { %1332 = vst [vmem:[%s2636_s20 + $0x380] sm:$0xff] %v1204_v42  ;;  %1333 = vst [vmem:[%s2636_s20 + $0x388] sm:$0xff] %v1205_v62  ;;  %v1210_v11 = vmul.f32 %v1070_v10, %v698_v25  ;;  %v1211_v63 = vmul.f32 %v1070_v10, %v699_v3  ;;  %v1208_v41 = vmul.f32 %v1065_v14, %v696_v15 }
 0x138   : > { %v1209_v17 = vmul.f32 %v1065_v14, %v697_v33  ;;  %v706_v49 = vmul.f32 %v2603_v57, %v3446_v26  ;;  %v707_v27 = vmul.f32 %v2770_v54, %v3447_v52  ;;  %v704_v6 = vmul.f32 %v2603_v57, %v3448_v51 }
 0x139   : > { %1338 = vst [vmem:[%s2636_s20 + $0x3b0] sm:$0xff] %v1210_v11  ;;  %1339 = vst [vmem:[%s2636_s20 + $0x3b8] sm:$0xff] %v1211_v63  ;;  %v705_v36 = vmul.f32 %v2770_v54, %v3449_v7 }
 0x13a   : > { %1336 = vst [vmem:[%s2636_s20 + $0x3a0] sm:$0xff] %v1208_v41  ;;  %1337 = vst [vmem:[%s2636_s20 + $0x3a8] sm:$0xff] %v1209_v17  ;;  %v1080_v44 = vpop.permute.xlu1 %1079  ;;  %v1075_v8 = vpop.permute.xlu0 %1074 }
 0x13b   : > { %v1214_v38 = vmul.f32 %v1080_v44, %v702_v1  ;;  %v1215_v48 = vmul.f32 %v1080_v44, %v703_v46  ;;  %v1212_v30 = vmul.f32 %v1075_v8, %v700_v23  ;;  %v1213_v28 = vmul.f32 %v1075_v8, %v701_v45 }
 0x13d   : > { %1342 = vst [vmem:[%s2636_s20 + $0x3d0] sm:$0xff] %v1214_v38  ;;  %1343 = vst [vmem:[%s2636_s20 + $0x3d8] sm:$0xff] %v1215_v48 }
 0x13e   : > { %1340 = vst [vmem:[%s2636_s20 + $0x3c0] sm:$0xff] %v1212_v30  ;;  %1341 = vst [vmem:[%s2636_s20 + $0x3c8] sm:$0xff] %v1213_v28  ;;  %v1090_v57 = vpop.permute.xlu1 %1089  ;;  %v1085_v47 = vpop.permute.xlu0 %1084 }
 0x13f   : > { %v1218_v54 = vmul.f32 %v1090_v57, %v706_v49  ;;  %v1219_v19 = vmul.f32 %v1090_v57, %v707_v27  ;;  %v1216_v22 = vmul.f32 %v1085_v47, %v704_v6  ;;  %v1217_v56 = vmul.f32 %v1085_v47, %v705_v36 }
 0x141   : > { %1346 = vst [vmem:[%s2636_s20 + $0x3f0] sm:$0xff] %v1218_v54  ;;  %1347 = vst [vmem:[%s2636_s20 + $0x3f8] sm:$0xff] %v1219_v19 }
 0x142   : > { %1344 = vst [vmem:[%s2636_s20 + $0x3e0] sm:$0xff] %v1216_v22  ;;  %1345 = vst [vmem:[%s2636_s20 + $0x3e8] sm:$0xff] %v1217_v56 }
 0x143   : > { %1610 = shalt.err (!%p1607_p5)
}
 0x144   : > { %s1611_s4 = scalar_lea.hbm %s3139_s27, 16384  ;;  %s1615_s16 = scalar_lea.hbm %s3196_s2, 32768 }
 0x145   : > { %p1612_p4 = scmp.ne.s32.totalorder %s3139_s27, %s1611_s4  ;;  %p1616_p12 = scmp.lt.u32.totalorder %s3139_s27, %s3196_s2 }
 0x146   : > { %p1617_p1 = scmp.lt.u32.totalorder %s1615_s16, %s1611_s4  ;;  %p1619_p8 = scmp.lt.u32.totalorder %s1611_s4, %s3139_s27 }
 0x147   : > { %p1613_p7 = pnand %p1612_p4, %p3450_p9 }
 0x148   : > { %p1618_p3 = por %p1617_p1, %p1616_p12 }
 0x149   : > { %p1614_p10 = pneg %p1613_p7 }
 0x14a   : > { %p1620_p11 = por %p1619_p8, %p1618_p3 }
 0x14c   : > { %p1621_p0 = pnand %p1620_p11, %p1614_p10 }
 0x14e   : > { %1624 = shalt.err (!%p1621_p0)
}
 0x14f   : > { %s1686_s21 = smov 256   ;;  %s1687_s20 = smov 16  }
 0x150   : > { %1470 = dma.vmem_to_hbm [thread:$0]  (%p3450_p9), %s3141_s15, 16384, %s3139_s27, %s1349_s12, %s1686_s21, %s1686_s21, %s1687_s20  }
 0x151 PF: > { %s1379_s7 = sand.u32 1, %s1659_s9   ;;  %p3451_p6 = scmp.ne.s32.totalorder %s3283_s24, 0 }
 0x152   : > { %p3452_p13 = scmp.ge.s32.totalorder %s1679_s14, 2  ;;  %s1380_s25 = scalar_lea.sflag [#allocation4], %s1379_s7 }
 0x154   : > { %p1477_p2 = pnand %p3452_p13, %p3451_p6 }
 0x156   : > { %1654 = dma.done.wait (!%p1477_p2), %s1380_s25, 16384  }
 0x157   : > { %1656 = vsyncadd (!%p1477_p2), %s1380_s25, 4294950912  ;;  %s18_s14 = sadd.s32 1, %s1679_s14   ;;  %s3453_s9 = smov %s1663_s10 }
 0x158   : > { %p15_p5 = scmp.ge.s32.totalorder %s18_s14, 4   ;;  %s3454_s10 = smov %s1667_s11 }
 0x159   : > { %s3455_s11 = smov %s1759_s23  ;;  %s3456_s12 = smov %s1675_s13 }
 0x15a   : > { %s3457_s13 = smov %s3459_s17  ;;  %17 = sbr.rel (!%p15_p5) target bundleno = 6 (0x6), region = 73 }
 0x161   :  { %1385 = vsyncpa [#allocation3], 1 }
 0x162   :  { %1387 = vsyncpa [#allocation3 + $0x1], 1 }
 0x163   :  { %1388 = vsyncpa [#allocation4], 1 }
 0x164   :  { %1390 = vsyncpa [#allocation4 + $0x1], 1 }

</bundles_post_ra>
